<compile_context>
chip_gen: v7x
topology: tpu7x:2x2x1
jax: 0.10.0
libtpu: 0.0.40
codegen_flags: <defaults>
</compile_context>

<pallas_src>
import functools

import jax
import jax.numpy as jnp
import numpy as np
from jax import lax
from jax.experimental import pallas as pl
from jax.experimental.pallas import tpu as pltpu

EPS = 1e-5
MXU_DTYPE = jnp.bfloat16  # matmul operand dtype (accumulation is always f32)


def resnext_kernel(xp_ref, w1_ref, wsc_ref, w2_ref, w3_ref,
                   g1_ref, b1_ref, g2_ref, b2_ref, g3_ref, b3_ref,
                   gsc_ref, bsc_ref, out_ref, *, H, W, inv_count):
    """Fused ResNextBlock forward on (N*H, W*C)-packed activations."""
    f32 = jnp.float32

    def mm(a, b):
        # MXU matmul: bf16 operands (weights are pre-cast, activations cast once
        # here), f32 accumulation.
        return jnp.dot(a.astype(MXU_DTYPE), b, preferred_element_type=f32)

    def channel_mean(v):
        # Per-channel mean of packed (rows, W*C) values, broadcast back into the
        # packed lane layout.  Rows: sublane reduction.  W lane groups: log2(W)
        # rotate-and-add steps (rotation = two static lane slices + concat), so
        # every lane group ends up holding the full per-channel sum -> the
        # broadcast back is free.  No MXU matmuls, exact f32 sums.
        c = v.shape[1] // W
        s = jnp.sum(v, axis=0, keepdims=True)          # (1, W*C)
        sh = c
        while sh < v.shape[1]:                          # W must be a power of 2
            s = s + jnp.concatenate([s[:, sh:], s[:, :sh]], axis=1)
            sh *= 2
        return s * inv_count

    def bn(y, gamma, beta, relu):
        # Training-mode BatchNorm (batch statistics, biased variance), f32.
        mean = channel_mean(y)
        d = y - mean
        var = channel_mean(d * d)
        o = d * lax.rsqrt(var + EPS) * gamma + beta
        return jnp.maximum(o, 0.0) if relu else o

    xp_bf = xp_ref[...].astype(MXU_DTYPE)               # cast input once

    # Shortcut branch: 1x1 conv + BN (kept in vregs; no HBM round trip).
    ident = bn(mm(xp_bf, wsc_ref[...]), gsc_ref[...], bsc_ref[...], relu=False)

    # conv1 (1x1) + bn1 + relu.
    h1 = bn(mm(xp_bf, w1_ref[...]), g1_ref[...], b1_ref[...], relu=True)

    # conv2: 3x3 grouped conv (padding=1) as three row-tap matmuls.  The dy
    # shift is a static sublane slice + zero row, with an iota mask zeroing rows
    # that cross an image boundary within the batch; the dx shift + x-padding is
    # baked into the banded w2_ref[dy].
    nh, wch = h1.shape
    zero_row = jnp.zeros((1, wch), f32)
    row = lax.broadcasted_iota(jnp.int32, (nh, wch), 0)
    up = jnp.where(row % H == 0, 0.0,
                   jnp.concatenate([zero_row, h1[:-1, :]], axis=0))   # row h-1
    dn = jnp.where(row % H == H - 1, 0.0,
                   jnp.concatenate([h1[1:, :], zero_row], axis=0))    # row h+1
    acc = mm(up, w2_ref[0]) + mm(h1, w2_ref[1]) + mm(dn, w2_ref[2])
    h2 = bn(acc, g2_ref[...], b2_ref[...], relu=True)

    # conv3 (1x1) + bn3 + residual add + relu.  Output tile (N*H, W*Cout) is
    # lane-dense (last dim multiple of 128) -> unmasked stores.
    pre = bn(mm(h2, w3_ref[...]), g3_ref[...], b3_ref[...], relu=False) + ident
    out_ref[...] = jnp.maximum(pre, 0.0)


def _packed_weights(w1, w2_full, w3, wsc, W):
    # kron packing is only used because C < 128 here (see TODO at top): it keeps
    # the activations lane-dense.  Weights are shipped to the kernel in bf16.
    f32 = jnp.float32
    eye_w = jnp.eye(W, dtype=f32)
    w1p = jnp.kron(eye_w, w1)        # (W*Cin, W*Ch)   : per-pixel 1x1 conv
    wscp = jnp.kron(eye_w, wsc)      # (W*Cin, W*Cout)
    w3p = jnp.kron(eye_w, w3)        # (W*Ch,  W*Cout)
    # Banded packed 3x3 weights: one (W*Ch, W*Ch) matrix per row tap dy; the dx
    # shift (and the x-direction zero padding) is encoded on block off-diagonals.
    w2p = jnp.stack([
        sum(jnp.kron(jnp.eye(W, k=1 - dx, dtype=f32), w2_full[dy, dx])
            for dx in range(3))
        for dy in range(3)])         # (3, W*Ch, W*Ch)
    cast = lambda a: a.astype(MXU_DTYPE)
    return cast(w1p), cast(wscp), cast(w3p), cast(w2p)


def resnext_block_pallas(x_nchw, params):
    w1, g1, b1, w2_full, g2, b2, w3, g3, b3, wsc, gsc, bsc = params
    # TODO(synk): keep activations NHWC end-to-end in production (these wrapper
    # transposes are negligible at this toy shape but are extra HBM round trips
    # at scale).
    x = jnp.transpose(x_nchw, (0, 2, 3, 1)).astype(jnp.float32)   # NCHW -> NHWC
    N, H, W, Cin = x.shape
    Cout = w3.shape[1]
    NH = N * H
    inv_count = 1.0 / float(N * H * W)
    assert W & (W - 1) == 0, "rotate-add BN reduction assumes W is a power of 2"

    xp = x.reshape(NH, W * Cin)                        # lane-packed (w, c) rows
    w1p, wscp, w3p, w2p = _packed_weights(w1, w2_full, w3, wsc, W)
    tile_w = lambda v: jnp.tile(v, (1, W)).astype(jnp.float32)  # per-channel -> packed

    vmem = pl.BlockSpec(memory_space=pltpu.MemorySpace.VMEM)

    # Whole fused block is VMEM-resident at this shape; a grid would only add
    # per-step overhead (see TODO at top for the production-size tiled variant).
    out_packed = pl.pallas_call(
        functools.partial(resnext_kernel, H=H, W=W, inv_count=inv_count),
        out_shape=jax.ShapeDtypeStruct((NH, W * Cout), jnp.float32),
        in_specs=[vmem] * 13,
        out_specs=vmem,
    )(xp, w1p, wscp, w2p, w3p,
      tile_w(g1), tile_w(b1), tile_w(g2), tile_w(b2),
      tile_w(g3), tile_w(b3), tile_w(gsc), tile_w(bsc))

    out = out_packed.reshape(N, H, W, Cout)
    return jnp.transpose(out, (0, 3, 1, 2))            # back to NCHW


def init_params(key, in_channel, out_channel, bottle_neck, group):
    hidden = out_channel // bottle_neck
    cg = hidden // group
    ks = jax.random.split(key, 12)

    def rnd(k, shape, fan_in):
        return (jax.random.normal(k, shape, jnp.float32) /
                np.sqrt(float(fan_in))).astype(jnp.float32)

    w1 = rnd(ks[0], (in_channel, hidden), in_channel)        # 1x1 conv as matmul
    w2_g = rnd(ks[1], (3, 3, cg, hidden), 9 * cg)            # grouped conv, HWIO
    w3 = rnd(ks[2], (hidden, out_channel), hidden)
    wsc = rnd(ks[3], (in_channel, out_channel), in_channel)  # shortcut 1x1 conv
    g1 = 1.0 + 0.1 * jax.random.normal(ks[4], (1, hidden), jnp.float32)
    b1 = 0.1 * jax.random.normal(ks[5], (1, hidden), jnp.float32)
    g2 = 1.0 + 0.1 * jax.random.normal(ks[6], (1, hidden), jnp.float32)
    b2 = 0.1 * jax.random.normal(ks[7], (1, hidden), jnp.float32)
    g3 = 1.0 + 0.1 * jax.random.normal(ks[8], (1, out_channel), jnp.float32)
    b3 = 0.1 * jax.random.normal(ks[9], (1, out_channel), jnp.float32)
    gsc = 1.0 + 0.1 * jax.random.normal(ks[10], (1, out_channel), jnp.float32)
    bsc = 0.1 * jax.random.normal(ks[11], (1, out_channel), jnp.float32)

    # Block-diagonal dense weight equivalent to the grouped 3x3 conv (cg << 128,
    # so the dense form wastes no MXU time vs. many tiny padded per-group dots).
    w2_full = jnp.zeros((3, 3, hidden, hidden), jnp.float32)
    for g in range(group):
        w2_full = w2_full.at[:, :, g * cg:(g + 1) * cg,
                             g * cg:(g + 1) * cg].set(
            w2_g[:, :, :, g * cg:(g + 1) * cg])

    params = (w1, g1, b1, w2_full, g2, b2, w3, g3, b3, wsc, gsc, bsc)
    return params, w2_g


def reference(x_nchw, params, w2_g, group):
    # Pure-JAX (f32) reference mirroring the PyTorch forward (training-mode BN).
    w1, g1, b1, _, g2, b2, w3, g3, b3, wsc, gsc, bsc = params
    x = jnp.transpose(x_nchw, (0, 2, 3, 1)).astype(jnp.float32)
    dn = ('NHWC', 'HWIO', 'NHWC')

    def bn(y, gamma, beta):
        mean = jnp.mean(y, axis=(0, 1, 2), keepdims=True)
        var = jnp.mean(jnp.square(y - mean), axis=(0, 1, 2), keepdims=True)
        return ((y - mean) / jnp.sqrt(var + EPS) * gamma.reshape(1, 1, 1, -1)
                + beta.reshape(1, 1, 1, -1))

    def conv1x1(inp, w):
        return lax.conv_general_dilated(inp, w.reshape(1, 1, *w.shape),
                                        (1, 1), 'VALID', dimension_numbers=dn)

    ident = bn(conv1x1(x, wsc), gsc, bsc)
    h1 = jax.nn.relu(bn(conv1x1(x, w1), g1, b1))
    h2 = jax.nn.relu(bn(lax.conv_general_dilated(
        h1, w2_g, (1, 1), ((1, 1), (1, 1)), dimension_numbers=dn,
        feature_group_count=group), g2, b2))
    out = jax.nn.relu(bn(conv1x1(h2, w3), g3, b3) + ident)
    return jnp.transpose(out, (0, 3, 1, 2))


if __name__ == "__main__":
    key = jax.random.PRNGKey(0)
    kx, kp = jax.random.split(key)

    N, Cin, H, W = 2, 4, 16, 16
    Cout, bottle_neck, group = 8, 2, 2
    # stride=1 only (see TODO above); shortcut conv is active since Cin != Cout.

    x = jax.random.normal(kx, (N, Cin, H, W), jnp.float32)
    params, w2_g = init_params(kp, Cin, Cout, bottle_neck, group)

    out = jax.block_until_ready(resnext_block_pallas(x, params))

    ref = reference(x, params, w2_g, group)
    # Kernel uses bf16 MXU operands (f32 accumulation, f32 BN stats); the
    # reference is all-f32 XLA, so compare with a bf16-appropriate tolerance.
    np.testing.assert_allclose(np.asarray(out), np.asarray(ref),
                               rtol=5e-2, atol=5e-2)
    print("KERNEL_OK")
</pallas_src>

<mosaic_0001>
module attributes {stable_mosaic.version = 11 : i64} {
  func.func @resnext_kernel(%arg0: memref<32x64xf32, #tpu.memory_space<vmem>>, %arg1: memref<64x64xbf16, #tpu.memory_space<vmem>>, %arg2: memref<64x128xbf16, #tpu.memory_space<vmem>>, %arg3: memref<3x64x64xbf16, #tpu.memory_space<vmem>>, %arg4: memref<64x128xbf16, #tpu.memory_space<vmem>>, %arg5: memref<1x64xf32, #tpu.memory_space<vmem>>, %arg6: memref<1x64xf32, #tpu.memory_space<vmem>>, %arg7: memref<1x64xf32, #tpu.memory_space<vmem>>, %arg8: memref<1x64xf32, #tpu.memory_space<vmem>>, %arg9: memref<1x128xf32, #tpu.memory_space<vmem>>, %arg10: memref<1x128xf32, #tpu.memory_space<vmem>>, %arg11: memref<1x128xf32, #tpu.memory_space<vmem>>, %arg12: memref<1x128xf32, #tpu.memory_space<vmem>>, %arg13: memref<32x128xf32, #tpu.memory_space<vmem>>) attributes {dimension_semantics = [], scalar_prefetch = 0 : i64, scratch_operands = 0 : i64, tpu.core_type = #tpu.core_type<tc>} {
    %c0 = arith.constant 0 : index
    %c0_0 = arith.constant 0 : index
    %0 = vector.load %arg0[%c0, %c0_0] : memref<32x64xf32, #tpu.memory_space<vmem>>, vector<32x64xf32>
    %1 = arith.truncf %0 : vector<32x64xf32> to vector<32x64xbf16>
    %c0_1 = arith.constant 0 : index
    %c0_2 = arith.constant 0 : index
    %2 = vector.load %arg2[%c0_1, %c0_2] : memref<64x128xbf16, #tpu.memory_space<vmem>>, vector<64x128xbf16>
    %cst = arith.constant dense<0.000000e+00> : vector<32x128xf32>
    %3 = tpu.matmul %1, %2, %cst {dimension_numbers = #tpu.dot_dimension_numbers<[1], [0], [0], [1], [0, 0, 1, 1], [], []>} : vector<32x64xbf16>, vector<64x128xbf16>, vector<32x128xf32> -> vector<32x128xf32>
    %c0_3 = arith.constant 0 : index
    %c0_4 = arith.constant 0 : index
    %4 = vector.load %arg11[%c0_3, %c0_4] : memref<1x128xf32, #tpu.memory_space<vmem>>, vector<1x128xf32>
    %c0_5 = arith.constant 0 : index
    %c0_6 = arith.constant 0 : index
    %5 = vector.load %arg12[%c0_5, %c0_6] : memref<1x128xf32, #tpu.memory_space<vmem>>, vector<1x128xf32>
    %cst_7 = arith.constant dense<0.000000e+00> : vector<128xf32>
    %6 = vector.multi_reduction <add>, %3, %cst_7 [0] : vector<32x128xf32> to vector<128xf32>
    %7 = vector.shape_cast %6 : vector<128xf32> to vector<1x128xf32>
    %8 = vector.extract_strided_slice %7 {offsets = [0, 8], sizes = [1, 120], strides = [1, 1]} : vector<1x128xf32> to vector<1x120xf32>
    %9 = vector.extract_strided_slice %7 {offsets = [0, 0], sizes = [1, 8], strides = [1, 1]} : vector<1x128xf32> to vector<1x8xf32>
    %10 = tpu.concatenate %8, %9 in 1 : vector<1x120xf32>, vector<1x8xf32> -> vector<1x128xf32>
    %11 = arith.addf %7, %10 : vector<1x128xf32>
    %12 = vector.extract_strided_slice %11 {offsets = [0, 16], sizes = [1, 112], strides = [1, 1]} : vector<1x128xf32> to vector<1x112xf32>
    %13 = vector.extract_strided_slice %11 {offsets = [0, 0], sizes = [1, 16], strides = [1, 1]} : vector<1x128xf32> to vector<1x16xf32>
    %14 = tpu.concatenate %12, %13 in 1 : vector<1x112xf32>, vector<1x16xf32> -> vector<1x128xf32>
    %15 = arith.addf %11, %14 : vector<1x128xf32>
    %16 = vector.extract_strided_slice %15 {offsets = [0, 32], sizes = [1, 96], strides = [1, 1]} : vector<1x128xf32> to vector<1x96xf32>
    %17 = vector.extract_strided_slice %15 {offsets = [0, 0], sizes = [1, 32], strides = [1, 1]} : vector<1x128xf32> to vector<1x32xf32>
    %18 = tpu.concatenate %16, %17 in 1 : vector<1x96xf32>, vector<1x32xf32> -> vector<1x128xf32>
    %19 = arith.addf %15, %18 : vector<1x128xf32>
    %20 = vector.extract_strided_slice %19 {offsets = [0, 64], sizes = [1, 64], strides = [1, 1]} : vector<1x128xf32> to vector<1x64xf32>
    %21 = vector.extract_strided_slice %19 {offsets = [0, 0], sizes = [1, 64], strides = [1, 1]} : vector<1x128xf32> to vector<1x64xf32>
    %22 = tpu.concatenate %20, %21 in 1 : vector<1x64xf32>, vector<1x64xf32> -> vector<1x128xf32>
    %23 = arith.addf %19, %22 : vector<1x128xf32>
    %cst_8 = arith.constant 0.001953125 : f32
    %24 = vector.broadcast %cst_8 : f32 to vector<1x128xf32>
    %25 = arith.mulf %23, %24 : vector<1x128xf32>
    %26 = vector.broadcast %25 : vector<1x128xf32> to vector<32x128xf32>
    %27 = arith.subf %3, %26 : vector<32x128xf32>
    %28 = arith.mulf %27, %27 : vector<32x128xf32>
    %cst_9 = arith.constant dense<0.000000e+00> : vector<128xf32>
    %29 = vector.multi_reduction <add>, %28, %cst_9 [0] : vector<32x128xf32> to vector<128xf32>
    %30 = vector.shape_cast %29 : vector<128xf32> to vector<1x128xf32>
    %31 = vector.extract_strided_slice %30 {offsets = [0, 8], sizes = [1, 120], strides = [1, 1]} : vector<1x128xf32> to vector<1x120xf32>
    %32 = vector.extract_strided_slice %30 {offsets = [0, 0], sizes = [1, 8], strides = [1, 1]} : vector<1x128xf32> to vector<1x8xf32>
    %33 = tpu.concatenate %31, %32 in 1 : vector<1x120xf32>, vector<1x8xf32> -> vector<1x128xf32>
    %34 = arith.addf %30, %33 : vector<1x128xf32>
    %35 = vector.extract_strided_slice %34 {offsets = [0, 16], sizes = [1, 112], strides = [1, 1]} : vector<1x128xf32> to vector<1x112xf32>
    %36 = vector.extract_strided_slice %34 {offsets = [0, 0], sizes = [1, 16], strides = [1, 1]} : vector<1x128xf32> to vector<1x16xf32>
    %37 = tpu.concatenate %35, %36 in 1 : vector<1x112xf32>, vector<1x16xf32> -> vector<1x128xf32>
    %38 = arith.addf %34, %37 : vector<1x128xf32>
    %39 = vector.extract_strided_slice %38 {offsets = [0, 32], sizes = [1, 96], strides = [1, 1]} : vector<1x128xf32> to vector<1x96xf32>
    %40 = vector.extract_strided_slice %38 {offsets = [0, 0], sizes = [1, 32], strides = [1, 1]} : vector<1x128xf32> to vector<1x32xf32>
    %41 = tpu.concatenate %39, %40 in 1 : vector<1x96xf32>, vector<1x32xf32> -> vector<1x128xf32>
    %42 = arith.addf %38, %41 : vector<1x128xf32>
    %43 = vector.extract_strided_slice %42 {offsets = [0, 64], sizes = [1, 64], strides = [1, 1]} : vector<1x128xf32> to vector<1x64xf32>
    %44 = vector.extract_strided_slice %42 {offsets = [0, 0], sizes = [1, 64], strides = [1, 1]} : vector<1x128xf32> to vector<1x64xf32>
    %45 = tpu.concatenate %43, %44 in 1 : vector<1x64xf32>, vector<1x64xf32> -> vector<1x128xf32>
    %46 = arith.addf %42, %45 : vector<1x128xf32>
    %cst_10 = arith.constant 0.001953125 : f32
    %47 = vector.broadcast %cst_10 : f32 to vector<1x128xf32>
    %48 = arith.mulf %46, %47 : vector<1x128xf32>
    %cst_11 = arith.constant 9.99999974E-6 : f32
    %49 = vector.broadcast %cst_11 : f32 to vector<1x128xf32>
    %50 = arith.addf %48, %49 : vector<1x128xf32>
    %51 = math.rsqrt %50 : vector<1x128xf32>
    %52 = vector.broadcast %51 : vector<1x128xf32> to vector<32x128xf32>
    %53 = arith.mulf %27, %52 : vector<32x128xf32>
    %54 = vector.broadcast %4 : vector<1x128xf32> to vector<32x128xf32>
    %55 = arith.mulf %53, %54 : vector<32x128xf32>
    %56 = vector.broadcast %5 : vector<1x128xf32> to vector<32x128xf32>
    %57 = arith.addf %55, %56 : vector<32x128xf32>
    %c0_12 = arith.constant 0 : index
    %c0_13 = arith.constant 0 : index
    %58 = vector.load %arg1[%c0_12, %c0_13] : memref<64x64xbf16, #tpu.memory_space<vmem>>, vector<64x64xbf16>
    %cst_14 = arith.constant dense<0.000000e+00> : vector<32x64xf32>
    %59 = tpu.matmul %1, %58, %cst_14 {dimension_numbers = #tpu.dot_dimension_numbers<[1], [0], [0], [1], [0, 0, 1, 1], [], []>} : vector<32x64xbf16>, vector<64x64xbf16>, vector<32x64xf32> -> vector<32x64xf32>
    %c0_15 = arith.constant 0 : index
    %c0_16 = arith.constant 0 : index
    %60 = vector.load %arg5[%c0_15, %c0_16] : memref<1x64xf32, #tpu.memory_space<vmem>>, vector<1x64xf32>
    %c0_17 = arith.constant 0 : index
    %c0_18 = arith.constant 0 : index
    %61 = vector.load %arg6[%c0_17, %c0_18] : memref<1x64xf32, #tpu.memory_space<vmem>>, vector<1x64xf32>
    %cst_19 = arith.constant dense<0.000000e+00> : vector<64xf32>
    %62 = vector.multi_reduction <add>, %59, %cst_19 [0] : vector<32x64xf32> to vector<64xf32>
    %63 = vector.shape_cast %62 : vector<64xf32> to vector<1x64xf32>
    %64 = vector.extract_strided_slice %63 {offsets = [0, 4], sizes = [1, 60], strides = [1, 1]} : vector<1x64xf32> to vector<1x60xf32>
    %65 = vector.extract_strided_slice %63 {offsets = [0, 0], sizes = [1, 4], strides = [1, 1]} : vector<1x64xf32> to vector<1x4xf32>
    %66 = tpu.concatenate %64, %65 in 1 : vector<1x60xf32>, vector<1x4xf32> -> vector<1x64xf32>
    %67 = arith.addf %63, %66 : vector<1x64xf32>
    %68 = vector.extract_strided_slice %67 {offsets = [0, 8], sizes = [1, 56], strides = [1, 1]} : vector<1x64xf32> to vector<1x56xf32>
    %69 = vector.extract_strided_slice %67 {offsets = [0, 0], sizes = [1, 8], strides = [1, 1]} : vector<1x64xf32> to vector<1x8xf32>
    %70 = tpu.concatenate %68, %69 in 1 : vector<1x56xf32>, vector<1x8xf32> -> vector<1x64xf32>
    %71 = arith.addf %67, %70 : vector<1x64xf32>
    %72 = vector.extract_strided_slice %71 {offsets = [0, 16], sizes = [1, 48], strides = [1, 1]} : vector<1x64xf32> to vector<1x48xf32>
    %73 = vector.extract_strided_slice %71 {offsets = [0, 0], sizes = [1, 16], strides = [1, 1]} : vector<1x64xf32> to vector<1x16xf32>
    %74 = tpu.concatenate %72, %73 in 1 : vector<1x48xf32>, vector<1x16xf32> -> vector<1x64xf32>
    %75 = arith.addf %71, %74 : vector<1x64xf32>
    %76 = vector.extract_strided_slice %75 {offsets = [0, 32], sizes = [1, 32], strides = [1, 1]} : vector<1x64xf32> to vector<1x32xf32>
    %77 = vector.extract_strided_slice %75 {offsets = [0, 0], sizes = [1, 32], strides = [1, 1]} : vector<1x64xf32> to vector<1x32xf32>
    %78 = tpu.concatenate %76, %77 in 1 : vector<1x32xf32>, vector<1x32xf32> -> vector<1x64xf32>
    %79 = arith.addf %75, %78 : vector<1x64xf32>
    %cst_20 = arith.constant 0.001953125 : f32
    %80 = vector.broadcast %cst_20 : f32 to vector<1x64xf32>
    %81 = arith.mulf %79, %80 : vector<1x64xf32>
    %82 = vector.broadcast %81 : vector<1x64xf32> to vector<32x64xf32>
    %83 = arith.subf %59, %82 : vector<32x64xf32>
    %84 = arith.mulf %83, %83 : vector<32x64xf32>
    %cst_21 = arith.constant dense<0.000000e+00> : vector<64xf32>
    %85 = vector.multi_reduction <add>, %84, %cst_21 [0] : vector<32x64xf32> to vector<64xf32>
    %86 = vector.shape_cast %85 : vector<64xf32> to vector<1x64xf32>
    %87 = vector.extract_strided_slice %86 {offsets = [0, 4], sizes = [1, 60], strides = [1, 1]} : vector<1x64xf32> to vector<1x60xf32>
    %88 = vector.extract_strided_slice %86 {offsets = [0, 0], sizes = [1, 4], strides = [1, 1]} : vector<1x64xf32> to vector<1x4xf32>
    %89 = tpu.concatenate %87, %88 in 1 : vector<1x60xf32>, vector<1x4xf32> -> vector<1x64xf32>
    %90 = arith.addf %86, %89 : vector<1x64xf32>
    %91 = vector.extract_strided_slice %90 {offsets = [0, 8], sizes = [1, 56], strides = [1, 1]} : vector<1x64xf32> to vector<1x56xf32>
    %92 = vector.extract_strided_slice %90 {offsets = [0, 0], sizes = [1, 8], strides = [1, 1]} : vector<1x64xf32> to vector<1x8xf32>
    %93 = tpu.concatenate %91, %92 in 1 : vector<1x56xf32>, vector<1x8xf32> -> vector<1x64xf32>
    %94 = arith.addf %90, %93 : vector<1x64xf32>
    %95 = vector.extract_strided_slice %94 {offsets = [0, 16], sizes = [1, 48], strides = [1, 1]} : vector<1x64xf32> to vector<1x48xf32>
    %96 = vector.extract_strided_slice %94 {offsets = [0, 0], sizes = [1, 16], strides = [1, 1]} : vector<1x64xf32> to vector<1x16xf32>
    %97 = tpu.concatenate %95, %96 in 1 : vector<1x48xf32>, vector<1x16xf32> -> vector<1x64xf32>
    %98 = arith.addf %94, %97 : vector<1x64xf32>
    %99 = vector.extract_strided_slice %98 {offsets = [0, 32], sizes = [1, 32], strides = [1, 1]} : vector<1x64xf32> to vector<1x32xf32>
    %100 = vector.extract_strided_slice %98 {offsets = [0, 0], sizes = [1, 32], strides = [1, 1]} : vector<1x64xf32> to vector<1x32xf32>
    %101 = tpu.concatenate %99, %100 in 1 : vector<1x32xf32>, vector<1x32xf32> -> vector<1x64xf32>
    %102 = arith.addf %98, %101 : vector<1x64xf32>
    %cst_22 = arith.constant 0.001953125 : f32
    %103 = vector.broadcast %cst_22 : f32 to vector<1x64xf32>
    %104 = arith.mulf %102, %103 : vector<1x64xf32>
    %cst_23 = arith.constant 9.99999974E-6 : f32
    %105 = vector.broadcast %cst_23 : f32 to vector<1x64xf32>
    %106 = arith.addf %104, %105 : vector<1x64xf32>
    %107 = math.rsqrt %106 : vector<1x64xf32>
    %108 = vector.broadcast %107 : vector<1x64xf32> to vector<32x64xf32>
    %109 = arith.mulf %83, %108 : vector<32x64xf32>
    %110 = vector.broadcast %60 : vector<1x64xf32> to vector<32x64xf32>
    %111 = arith.mulf %109, %110 : vector<32x64xf32>
    %112 = vector.broadcast %61 : vector<1x64xf32> to vector<32x64xf32>
    %113 = arith.addf %111, %112 : vector<32x64xf32>
    %cst_24 = arith.constant 0.000000e+00 : f32
    %114 = vector.broadcast %cst_24 : f32 to vector<32x64xf32>
    %115 = arith.maximumf %113, %114 : vector<32x64xf32>
    %cst_25 = arith.constant 0.000000e+00 : f32
    %116 = vector.broadcast %cst_25 : f32 to vector<1x64xf32>
    %117 = tpu.iota {dimensions = array<i32: 0>} : vector<32x64xi32>
    %c16_i32 = arith.constant 16 : i32
    %c0_i32 = arith.constant 0 : i32
    %118 = arith.cmpi eq, %c16_i32, %c0_i32 : i32
    %c1_i32 = arith.constant 1 : i32
    %119 = arith.select %118, %c1_i32, %c16_i32 : i32
    %120 = vector.broadcast %119 : i32 to vector<32x64xi32>
    %121 = arith.remsi %117, %120 : vector<32x64xi32>
    %c0_i32_26 = arith.constant 0 : i32
    %122 = vector.broadcast %c0_i32_26 : i32 to vector<32x64xi32>
    %123 = arith.cmpi ne, %121, %122 : vector<32x64xi32>
    %c0_i32_27 = arith.constant 0 : i32
    %124 = vector.broadcast %c0_i32_27 : i32 to vector<32x64xi32>
    %125 = arith.cmpi slt, %121, %124 : vector<32x64xi32>
    %c0_i32_28 = arith.constant 0 : i32
    %126 = arith.cmpi slt, %119, %c0_i32_28 : i32
    %127 = vector.broadcast %126 : i1 to vector<32x64xi1>
    %128 = vector.broadcast %127 : vector<32x64xi1> to vector<32x64xi1>
    %129 = arith.xori %125, %128 : vector<32x64xi1>
    %130 = arith.andi %129, %123 : vector<32x64xi1>
    %131 = vector.broadcast %119 : i32 to vector<32x64xi32>
    %132 = arith.addi %121, %131 : vector<32x64xi32>
    %133 = arith.select %130, %132, %121 : vector<32x64xi1>, vector<32x64xi32>
    %c0_i32_29 = arith.constant 0 : i32
    %134 = vector.broadcast %c0_i32_29 : i32 to vector<32x64xi32>
    %135 = arith.cmpi eq, %133, %134 : vector<32x64xi32>
    %136 = vector.extract_strided_slice %115 {offsets = [0, 0], sizes = [31, 64], strides = [1, 1]} : vector<32x64xf32> to vector<31x64xf32>
    %137 = tpu.concatenate %116, %136 in 0 : vector<1x64xf32>, vector<31x64xf32> -> vector<32x64xf32>
    %cst_30 = arith.constant 0.000000e+00 : f32
    %138 = vector.broadcast %cst_30 : f32 to vector<32x64xf32>
    %139 = arith.select %135, %138, %137 : vector<32x64xi1>, vector<32x64xf32>
    %c16_i32_31 = arith.constant 16 : i32
    %c0_i32_32 = arith.constant 0 : i32
    %140 = arith.cmpi eq, %c16_i32_31, %c0_i32_32 : i32
    %c1_i32_33 = arith.constant 1 : i32
    %141 = arith.select %140, %c1_i32_33, %c16_i32_31 : i32
    %142 = vector.broadcast %141 : i32 to vector<32x64xi32>
    %143 = arith.remsi %117, %142 : vector<32x64xi32>
    %c0_i32_34 = arith.constant 0 : i32
    %144 = vector.broadcast %c0_i32_34 : i32 to vector<32x64xi32>
    %145 = arith.cmpi ne, %143, %144 : vector<32x64xi32>
    %c0_i32_35 = arith.constant 0 : i32
    %146 = vector.broadcast %c0_i32_35 : i32 to vector<32x64xi32>
    %147 = arith.cmpi slt, %143, %146 : vector<32x64xi32>
    %c0_i32_36 = arith.constant 0 : i32
    %148 = arith.cmpi slt, %141, %c0_i32_36 : i32
    %149 = vector.broadcast %148 : i1 to vector<32x64xi1>
    %150 = vector.broadcast %149 : vector<32x64xi1> to vector<32x64xi1>
    %151 = arith.xori %147, %150 : vector<32x64xi1>
    %152 = arith.andi %151, %145 : vector<32x64xi1>
    %153 = vector.broadcast %141 : i32 to vector<32x64xi32>
    %154 = arith.addi %143, %153 : vector<32x64xi32>
    %155 = arith.select %152, %154, %143 : vector<32x64xi1>, vector<32x64xi32>
    %c15_i32 = arith.constant 15 : i32
    %156 = vector.broadcast %c15_i32 : i32 to vector<32x64xi32>
    %157 = arith.cmpi eq, %155, %156 : vector<32x64xi32>
    %158 = vector.extract_strided_slice %115 {offsets = [1, 0], sizes = [31, 64], strides = [1, 1]} : vector<32x64xf32> to vector<31x64xf32>
    %159 = tpu.concatenate %158, %116 in 0 : vector<31x64xf32>, vector<1x64xf32> -> vector<32x64xf32>
    %cst_37 = arith.constant 0.000000e+00 : f32
    %160 = vector.broadcast %cst_37 : f32 to vector<32x64xf32>
    %161 = arith.select %157, %160, %159 : vector<32x64xi1>, vector<32x64xf32>
    %c0_38 = arith.constant 0 : index
    %c0_39 = arith.constant 0 : index
    %c0_40 = arith.constant 0 : index
    %162 = vector.load %arg3[%c0_38, %c0_39, %c0_40] : memref<3x64x64xbf16, #tpu.memory_space<vmem>>, vector<1x64x64xbf16>
    %163 = vector.shape_cast %162 : vector<1x64x64xbf16> to vector<64x64xbf16>
    %164 = arith.truncf %139 : vector<32x64xf32> to vector<32x64xbf16>
    %cst_41 = arith.constant dense<0.000000e+00> : vector<32x64xf32>
    %165 = tpu.matmul %164, %163, %cst_41 {dimension_numbers = #tpu.dot_dimension_numbers<[1], [0], [0], [1], [0, 0, 1, 1], [], []>} : vector<32x64xbf16>, vector<64x64xbf16>, vector<32x64xf32> -> vector<32x64xf32>
    %c1 = arith.constant 1 : index
    %c0_42 = arith.constant 0 : index
    %c0_43 = arith.constant 0 : index
    %166 = vector.load %arg3[%c1, %c0_42, %c0_43] : memref<3x64x64xbf16, #tpu.memory_space<vmem>>, vector<1x64x64xbf16>
    %167 = vector.shape_cast %166 : vector<1x64x64xbf16> to vector<64x64xbf16>
    %168 = arith.truncf %115 : vector<32x64xf32> to vector<32x64xbf16>
    %cst_44 = arith.constant dense<0.000000e+00> : vector<32x64xf32>
    %169 = tpu.matmul %168, %167, %cst_44 {dimension_numbers = #tpu.dot_dimension_numbers<[1], [0], [0], [1], [0, 0, 1, 1], [], []>} : vector<32x64xbf16>, vector<64x64xbf16>, vector<32x64xf32> -> vector<32x64xf32>
    %170 = arith.addf %165, %169 : vector<32x64xf32>
    %c2 = arith.constant 2 : index
    %c0_45 = arith.constant 0 : index
    %c0_46 = arith.constant 0 : index
    %171 = vector.load %arg3[%c2, %c0_45, %c0_46] : memref<3x64x64xbf16, #tpu.memory_space<vmem>>, vector<1x64x64xbf16>
    %172 = vector.shape_cast %171 : vector<1x64x64xbf16> to vector<64x64xbf16>
    %173 = arith.truncf %161 : vector<32x64xf32> to vector<32x64xbf16>
    %cst_47 = arith.constant dense<0.000000e+00> : vector<32x64xf32>
    %174 = tpu.matmul %173, %172, %cst_47 {dimension_numbers = #tpu.dot_dimension_numbers<[1], [0], [0], [1], [0, 0, 1, 1], [], []>} : vector<32x64xbf16>, vector<64x64xbf16>, vector<32x64xf32> -> vector<32x64xf32>
    %175 = arith.addf %170, %174 : vector<32x64xf32>
    %c0_48 = arith.constant 0 : index
    %c0_49 = arith.constant 0 : index
    %176 = vector.load %arg7[%c0_48, %c0_49] : memref<1x64xf32, #tpu.memory_space<vmem>>, vector<1x64xf32>
    %c0_50 = arith.constant 0 : index
    %c0_51 = arith.constant 0 : index
    %177 = vector.load %arg8[%c0_50, %c0_51] : memref<1x64xf32, #tpu.memory_space<vmem>>, vector<1x64xf32>
    %cst_52 = arith.constant dense<0.000000e+00> : vector<64xf32>
    %178 = vector.multi_reduction <add>, %175, %cst_52 [0] : vector<32x64xf32> to vector<64xf32>
    %179 = vector.shape_cast %178 : vector<64xf32> to vector<1x64xf32>
    %180 = vector.extract_strided_slice %179 {offsets = [0, 4], sizes = [1, 60], strides = [1, 1]} : vector<1x64xf32> to vector<1x60xf32>
    %181 = vector.extract_strided_slice %179 {offsets = [0, 0], sizes = [1, 4], strides = [1, 1]} : vector<1x64xf32> to vector<1x4xf32>
    %182 = tpu.concatenate %180, %181 in 1 : vector<1x60xf32>, vector<1x4xf32> -> vector<1x64xf32>
    %183 = arith.addf %179, %182 : vector<1x64xf32>
    %184 = vector.extract_strided_slice %183 {offsets = [0, 8], sizes = [1, 56], strides = [1, 1]} : vector<1x64xf32> to vector<1x56xf32>
    %185 = vector.extract_strided_slice %183 {offsets = [0, 0], sizes = [1, 8], strides = [1, 1]} : vector<1x64xf32> to vector<1x8xf32>
    %186 = tpu.concatenate %184, %185 in 1 : vector<1x56xf32>, vector<1x8xf32> -> vector<1x64xf32>
    %187 = arith.addf %183, %186 : vector<1x64xf32>
    %188 = vector.extract_strided_slice %187 {offsets = [0, 16], sizes = [1, 48], strides = [1, 1]} : vector<1x64xf32> to vector<1x48xf32>
    %189 = vector.extract_strided_slice %187 {offsets = [0, 0], sizes = [1, 16], strides = [1, 1]} : vector<1x64xf32> to vector<1x16xf32>
    %190 = tpu.concatenate %188, %189 in 1 : vector<1x48xf32>, vector<1x16xf32> -> vector<1x64xf32>
    %191 = arith.addf %187, %190 : vector<1x64xf32>
    %192 = vector.extract_strided_slice %191 {offsets = [0, 32], sizes = [1, 32], strides = [1, 1]} : vector<1x64xf32> to vector<1x32xf32>
    %193 = vector.extract_strided_slice %191 {offsets = [0, 0], sizes = [1, 32], strides = [1, 1]} : vector<1x64xf32> to vector<1x32xf32>
    %194 = tpu.concatenate %192, %193 in 1 : vector<1x32xf32>, vector<1x32xf32> -> vector<1x64xf32>
    %195 = arith.addf %191, %194 : vector<1x64xf32>
    %cst_53 = arith.constant 0.001953125 : f32
    %196 = vector.broadcast %cst_53 : f32 to vector<1x64xf32>
    %197 = arith.mulf %195, %196 : vector<1x64xf32>
    %198 = vector.broadcast %197 : vector<1x64xf32> to vector<32x64xf32>
    %199 = arith.subf %175, %198 : vector<32x64xf32>
    %200 = arith.mulf %199, %199 : vector<32x64xf32>
    %cst_54 = arith.constant dense<0.000000e+00> : vector<64xf32>
    %201 = vector.multi_reduction <add>, %200, %cst_54 [0] : vector<32x64xf32> to vector<64xf32>
    %202 = vector.shape_cast %201 : vector<64xf32> to vector<1x64xf32>
    %203 = vector.extract_strided_slice %202 {offsets = [0, 4], sizes = [1, 60], strides = [1, 1]} : vector<1x64xf32> to vector<1x60xf32>
    %204 = vector.extract_strided_slice %202 {offsets = [0, 0], sizes = [1, 4], strides = [1, 1]} : vector<1x64xf32> to vector<1x4xf32>
    %205 = tpu.concatenate %203, %204 in 1 : vector<1x60xf32>, vector<1x4xf32> -> vector<1x64xf32>
    %206 = arith.addf %202, %205 : vector<1x64xf32>
    %207 = vector.extract_strided_slice %206 {offsets = [0, 8], sizes = [1, 56], strides = [1, 1]} : vector<1x64xf32> to vector<1x56xf32>
    %208 = vector.extract_strided_slice %206 {offsets = [0, 0], sizes = [1, 8], strides = [1, 1]} : vector<1x64xf32> to vector<1x8xf32>
    %209 = tpu.concatenate %207, %208 in 1 : vector<1x56xf32>, vector<1x8xf32> -> vector<1x64xf32>
    %210 = arith.addf %206, %209 : vector<1x64xf32>
    %211 = vector.extract_strided_slice %210 {offsets = [0, 16], sizes = [1, 48], strides = [1, 1]} : vector<1x64xf32> to vector<1x48xf32>
    %212 = vector.extract_strided_slice %210 {offsets = [0, 0], sizes = [1, 16], strides = [1, 1]} : vector<1x64xf32> to vector<1x16xf32>
    %213 = tpu.concatenate %211, %212 in 1 : vector<1x48xf32>, vector<1x16xf32> -> vector<1x64xf32>
    %214 = arith.addf %210, %213 : vector<1x64xf32>
    %215 = vector.extract_strided_slice %214 {offsets = [0, 32], sizes = [1, 32], strides = [1, 1]} : vector<1x64xf32> to vector<1x32xf32>
    %216 = vector.extract_strided_slice %214 {offsets = [0, 0], sizes = [1, 32], strides = [1, 1]} : vector<1x64xf32> to vector<1x32xf32>
    %217 = tpu.concatenate %215, %216 in 1 : vector<1x32xf32>, vector<1x32xf32> -> vector<1x64xf32>
    %218 = arith.addf %214, %217 : vector<1x64xf32>
    %cst_55 = arith.constant 0.001953125 : f32
    %219 = vector.broadcast %cst_55 : f32 to vector<1x64xf32>
    %220 = arith.mulf %218, %219 : vector<1x64xf32>
    %cst_56 = arith.constant 9.99999974E-6 : f32
    %221 = vector.broadcast %cst_56 : f32 to vector<1x64xf32>
    %222 = arith.addf %220, %221 : vector<1x64xf32>
    %223 = math.rsqrt %222 : vector<1x64xf32>
    %224 = vector.broadcast %223 : vector<1x64xf32> to vector<32x64xf32>
    %225 = arith.mulf %199, %224 : vector<32x64xf32>
    %226 = vector.broadcast %176 : vector<1x64xf32> to vector<32x64xf32>
    %227 = arith.mulf %225, %226 : vector<32x64xf32>
    %228 = vector.broadcast %177 : vector<1x64xf32> to vector<32x64xf32>
    %229 = arith.addf %227, %228 : vector<32x64xf32>
    %cst_57 = arith.constant 0.000000e+00 : f32
    %230 = vector.broadcast %cst_57 : f32 to vector<32x64xf32>
    %231 = arith.maximumf %229, %230 : vector<32x64xf32>
    %c0_58 = arith.constant 0 : index
    %c0_59 = arith.constant 0 : index
    %232 = vector.load %arg4[%c0_58, %c0_59] : memref<64x128xbf16, #tpu.memory_space<vmem>>, vector<64x128xbf16>
    %233 = arith.truncf %231 : vector<32x64xf32> to vector<32x64xbf16>
    %cst_60 = arith.constant dense<0.000000e+00> : vector<32x128xf32>
    %234 = tpu.matmul %233, %232, %cst_60 {dimension_numbers = #tpu.dot_dimension_numbers<[1], [0], [0], [1], [0, 0, 1, 1], [], []>} : vector<32x64xbf16>, vector<64x128xbf16>, vector<32x128xf32> -> vector<32x128xf32>
    %c0_61 = arith.constant 0 : index
    %c0_62 = arith.constant 0 : index
    %235 = vector.load %arg9[%c0_61, %c0_62] : memref<1x128xf32, #tpu.memory_space<vmem>>, vector<1x128xf32>
    %c0_63 = arith.constant 0 : index
    %c0_64 = arith.constant 0 : index
    %236 = vector.load %arg10[%c0_63, %c0_64] : memref<1x128xf32, #tpu.memory_space<vmem>>, vector<1x128xf32>
    %cst_65 = arith.constant dense<0.000000e+00> : vector<128xf32>
    %237 = vector.multi_reduction <add>, %234, %cst_65 [0] : vector<32x128xf32> to vector<128xf32>
    %238 = vector.shape_cast %237 : vector<128xf32> to vector<1x128xf32>
    %239 = vector.extract_strided_slice %238 {offsets = [0, 8], sizes = [1, 120], strides = [1, 1]} : vector<1x128xf32> to vector<1x120xf32>
    %240 = vector.extract_strided_slice %238 {offsets = [0, 0], sizes = [1, 8], strides = [1, 1]} : vector<1x128xf32> to vector<1x8xf32>
    %241 = tpu.concatenate %239, %240 in 1 : vector<1x120xf32>, vector<1x8xf32> -> vector<1x128xf32>
    %242 = arith.addf %238, %241 : vector<1x128xf32>
    %243 = vector.extract_strided_slice %242 {offsets = [0, 16], sizes = [1, 112], strides = [1, 1]} : vector<1x128xf32> to vector<1x112xf32>
    %244 = vector.extract_strided_slice %242 {offsets = [0, 0], sizes = [1, 16], strides = [1, 1]} : vector<1x128xf32> to vector<1x16xf32>
    %245 = tpu.concatenate %243, %244 in 1 : vector<1x112xf32>, vector<1x16xf32> -> vector<1x128xf32>
    %246 = arith.addf %242, %245 : vector<1x128xf32>
    %247 = vector.extract_strided_slice %246 {offsets = [0, 32], sizes = [1, 96], strides = [1, 1]} : vector<1x128xf32> to vector<1x96xf32>
    %248 = vector.extract_strided_slice %246 {offsets = [0, 0], sizes = [1, 32], strides = [1, 1]} : vector<1x128xf32> to vector<1x32xf32>
    %249 = tpu.concatenate %247, %248 in 1 : vector<1x96xf32>, vector<1x32xf32> -> vector<1x128xf32>
    %250 = arith.addf %246, %249 : vector<1x128xf32>
    %251 = vector.extract_strided_slice %250 {offsets = [0, 64], sizes = [1, 64], strides = [1, 1]} : vector<1x128xf32> to vector<1x64xf32>
    %252 = vector.extract_strided_slice %250 {offsets = [0, 0], sizes = [1, 64], strides = [1, 1]} : vector<1x128xf32> to vector<1x64xf32>
    %253 = tpu.concatenate %251, %252 in 1 : vector<1x64xf32>, vector<1x64xf32> -> vector<1x128xf32>
    %254 = arith.addf %250, %253 : vector<1x128xf32>
    %cst_66 = arith.constant 0.001953125 : f32
    %255 = vector.broadcast %cst_66 : f32 to vector<1x128xf32>
    %256 = arith.mulf %254, %255 : vector<1x128xf32>
    %257 = vector.broadcast %256 : vector<1x128xf32> to vector<32x128xf32>
    %258 = arith.subf %234, %257 : vector<32x128xf32>
    %259 = arith.mulf %258, %258 : vector<32x128xf32>
    %cst_67 = arith.constant dense<0.000000e+00> : vector<128xf32>
    %260 = vector.multi_reduction <add>, %259, %cst_67 [0] : vector<32x128xf32> to vector<128xf32>
    %261 = vector.shape_cast %260 : vector<128xf32> to vector<1x128xf32>
    %262 = vector.extract_strided_slice %261 {offsets = [0, 8], sizes = [1, 120], strides = [1, 1]} : vector<1x128xf32> to vector<1x120xf32>
    %263 = vector.extract_strided_slice %261 {offsets = [0, 0], sizes = [1, 8], strides = [1, 1]} : vector<1x128xf32> to vector<1x8xf32>
    %264 = tpu.concatenate %262, %263 in 1 : vector<1x120xf32>, vector<1x8xf32> -> vector<1x128xf32>
    %265 = arith.addf %261, %264 : vector<1x128xf32>
    %266 = vector.extract_strided_slice %265 {offsets = [0, 16], sizes = [1, 112], strides = [1, 1]} : vector<1x128xf32> to vector<1x112xf32>
    %267 = vector.extract_strided_slice %265 {offsets = [0, 0], sizes = [1, 16], strides = [1, 1]} : vector<1x128xf32> to vector<1x16xf32>
    %268 = tpu.concatenate %266, %267 in 1 : vector<1x112xf32>, vector<1x16xf32> -> vector<1x128xf32>
    %269 = arith.addf %265, %268 : vector<1x128xf32>
    %270 = vector.extract_strided_slice %269 {offsets = [0, 32], sizes = [1, 96], strides = [1, 1]} : vector<1x128xf32> to vector<1x96xf32>
    %271 = vector.extract_strided_slice %269 {offsets = [0, 0], sizes = [1, 32], strides = [1, 1]} : vector<1x128xf32> to vector<1x32xf32>
    %272 = tpu.concatenate %270, %271 in 1 : vector<1x96xf32>, vector<1x32xf32> -> vector<1x128xf32>
    %273 = arith.addf %269, %272 : vector<1x128xf32>
    %274 = vector.extract_strided_slice %273 {offsets = [0, 64], sizes = [1, 64], strides = [1, 1]} : vector<1x128xf32> to vector<1x64xf32>
    %275 = vector.extract_strided_slice %273 {offsets = [0, 0], sizes = [1, 64], strides = [1, 1]} : vector<1x128xf32> to vector<1x64xf32>
    %276 = tpu.concatenate %274, %275 in 1 : vector<1x64xf32>, vector<1x64xf32> -> vector<1x128xf32>
    %277 = arith.addf %273, %276 : vector<1x128xf32>
    %cst_68 = arith.constant 0.001953125 : f32
    %278 = vector.broadcast %cst_68 : f32 to vector<1x128xf32>
    %279 = arith.mulf %277, %278 : vector<1x128xf32>
    %cst_69 = arith.constant 9.99999974E-6 : f32
    %280 = vector.broadcast %cst_69 : f32 to vector<1x128xf32>
    %281 = arith.addf %279, %280 : vector<1x128xf32>
    %282 = math.rsqrt %281 : vector<1x128xf32>
    %283 = vector.broadcast %282 : vector<1x128xf32> to vector<32x128xf32>
    %284 = arith.mulf %258, %283 : vector<32x128xf32>
    %285 = vector.broadcast %235 : vector<1x128xf32> to vector<32x128xf32>
    %286 = arith.mulf %284, %285 : vector<32x128xf32>
    %287 = vector.broadcast %236 : vector<1x128xf32> to vector<32x128xf32>
    %288 = arith.addf %286, %287 : vector<32x128xf32>
    %289 = arith.addf %288, %57 : vector<32x128xf32>
    %cst_70 = arith.constant 0.000000e+00 : f32
    %290 = vector.broadcast %cst_70 : f32 to vector<32x128xf32>
    %291 = arith.maximumf %289, %290 : vector<32x128xf32>
    %c0_71 = arith.constant 0 : index
    %c0_72 = arith.constant 0 : index
    %292 = vector.load %arg13[%c0_71, %c0_72] : memref<32x128xf32, #tpu.memory_space<vmem>>, vector<32x128xf32>
    tpu.vector_store %arg13[%c0_71, %c0_72], %291 {strides = array<i32>} : memref<32x128xf32, #tpu.memory_space<vmem>>, vector<32x128xf32>,
    return
  }
}

</mosaic_0001>

<bundles_post_ra>
// kernel: tpu_custom_call.1
= control target key start
LH: loop header
LB: loop body
LE: loop exit
PB: predicated region body
PF: predicated region fallthrough
CT: control target
= control target key end

     0   :  { %18 = vsyncpa [#allocation3], 0  ;;  %s2048_s0 = inlined_call_operand.hbm [shape: f32[32,64], index: 0, kind: input, shape index: {}]   ;;  %s2049_s1 = inlined_call_operand.hbm [shape: bf16[64,64], index: 1, kind: input, shape index: {}]   ;;  %s2050_s2 = inlined_call_operand.hbm [shape: bf16[64,128], index: 2, kind: input, shape index: {}]   ;;  %s2051_s3 = inlined_call_operand.hbm [shape: bf16[3,64,64], index: 3, kind: input, shape index: {}]   ;;  %s2052_s4 = inlined_call_operand.hbm [shape: bf16[64,128], index: 4, kind: input, shape index: {}]   ;;  %s2053_s5 = inlined_call_operand.vmem [shape: f32[1,64], index: 5, kind: input, shape index: {}]   ;;  %s2054_s6 = inlined_call_operand.vmem [shape: f32[1,64], index: 6, kind: input, shape index: {}]   ;;  %s2055_s7 = inlined_call_operand.vmem [shape: f32[1,64], index: 7, kind: input, shape index: {}]   ;;  %s2056_s8 = inlined_call_operand.vmem [shape: f32[1,64], index: 8, kind: input, shape index: {}]   ;;  %s2057_s9 = inlined_call_operand.vmem [shape: f32[1,128], index: 9, kind: input, shape index: {}]   ;;  %s2058_s10 = inlined_call_operand.vmem [shape: f32[1,128], index: 10, kind: input, shape index: {}]   ;;  %s2059_s11 = inlined_call_operand.vmem [shape: f32[1,128], index: 11, kind: input, shape index: {}]   ;;  %s2060_s12 = inlined_call_operand.vmem [shape: f32[1,128], index: 12, kind: input, shape index: {}]   ;;  %s2061_s13 = inlined_call_operand.hbm [shape: f32[32,128], index: 13, kind: output, shape index: {}]  }
   0x1   :  { %19 = vsyncpa [#allocation6], 0 }
   0x2   :  { %20 = vsyncpa [#allocation9], 0 }
   0x3   :  { %21 = vsyncpa [#allocation4], 0  ;;  %s1639_s25 = smov [#allocation5]   ;;  %s1499_s29 = scalar_lea.hbm %s2049_s1, 512 }
   0x4   :  { %s39_s26 = sshll.u32 %s1639_s25, 4  ;;  %p1500_p0 = scmp.ne.s32.totalorder %s2049_s1, %s1499_s29  ;;  %s40_s26 = int_to_ptr.vmem [resolvable:$true] %s39_s26 }
   0x5   :  { %p1503_p1 = scmp.lt.u32.totalorder %s1499_s29, %s2049_s1 }
   0x7   :  { %p1505_p2 = pnand %p1503_p1, %p1500_p0 }
   0x9   :  { %1508 = shalt.err (!%p1505_p2)
}
   0xa   :  { %s1509_s17 = scalar_lea.vmem %s40_s26, 512  ;;  %p1514_p4 = scmp.lt.s32.totalorder %s40_s26, %s40_s26 }
   0xb   :  { %p1510_p3 = scmp.ne.s32.totalorder %s40_s26, %s1509_s17  ;;  %p1515_p5 = scmp.lt.s32.totalorder %s1509_s17, %s1509_s17 }
   0xd   :  { %p1516_p6 = por %p1515_p5, %p1514_p4 }
   0xf   :  { %p1517_p7 = pnand %p1516_p6, %p1510_p3 }
  0x11   :  { %1520 = shalt.err (!%p1517_p7)
}
  0x12   :  { %s1640_s18 = smov 64   ;;  %s1641_s19 = smov 4  }
  0x13   :  { %45 = dma.hbm_to_vmem [thread:$0]  %s2049_s1, 512, %s40_s26, [#allocation6], %s1640_s18, %s1640_s18, %s1641_s19  }
  0x14   :  { %s1642_s22 = smov [#allocation8]   ;;  %s1643_s24 = smov [#allocation2]  }
  0x15   :  { %s63_s23 = sshll.u32 %s1642_s22, 4  ;;  %s27_s25 = sshll.u32 %s1643_s24, 4  ;;  %s64_s23 = int_to_ptr.vmem [resolvable:$true] %s63_s23  ;;  %s28_s25 = int_to_ptr.vmem [resolvable:$true] %s27_s25 }
  0x16   :  { %s1521_s29 = scalar_lea.hbm %s2051_s3, 1536 }
  0x17   :  { %p1522_p8 = scmp.ne.s32.totalorder %s2051_s3, %s1521_s29  ;;  %p1525_p9 = scmp.lt.u32.totalorder %s1521_s29, %s2051_s3 }
  0x19   :  { %p1527_p10 = pnand %p1525_p9, %p1522_p8 }
  0x1b   :  { %1530 = shalt.err (!%p1527_p10)
}
  0x1c   :  { %s1531_s1 = scalar_lea.vmem %s64_s23, 1536  ;;  %p1536_p12 = scmp.lt.s32.totalorder %s64_s23, %s64_s23 }
  0x1d   :  { %p1532_p11 = scmp.ne.s32.totalorder %s64_s23, %s1531_s1  ;;  %p1537_p13 = scmp.lt.s32.totalorder %s1531_s1, %s1531_s1 }
  0x1f   :  { %p1538_p0 = por %p1537_p13, %p1536_p12 }
  0x21   :  { %p1539_p1 = pnand %p1538_p0, %p1532_p11 }
  0x23   :  { %1542 = shalt.err (!%p1539_p1)
}
  0x24   :  { %69 = dma.hbm_to_vmem [thread:$0]  %s2051_s3, 1536, %s64_s23, [#allocation9], %s1640_s18, %s1640_s18, %s1641_s19  }
  0x25   :  { %s1543_s22 = scalar_lea.hbm %s2048_s0, 512 }
  0x26   :  { %p1544_p2 = scmp.ne.s32.totalorder %s2048_s0, %s1543_s22  ;;  %p1547_p3 = scmp.lt.u32.totalorder %s1543_s22, %s2048_s0 }
  0x28   :  { %p1549_p4 = pnand %p1547_p3, %p1544_p2 }
  0x2a   :  { %1552 = shalt.err (!%p1549_p4)
}
  0x2b   :  { %s1553_s30 = scalar_lea.vmem %s28_s25, 512  ;;  %p1558_p6 = scmp.lt.s32.totalorder %s28_s25, %s28_s25 }
  0x2c   :  { %p1554_p5 = scmp.ne.s32.totalorder %s28_s25, %s1553_s30  ;;  %p1559_p7 = scmp.lt.s32.totalorder %s1553_s30, %s1553_s30 }
  0x2e   :  { %p1560_p8 = por %p1559_p7, %p1558_p6 }
  0x30   :  { %p1561_p9 = pnand %p1560_p8, %p1554_p5 }
  0x32   :  { %1564 = shalt.err (!%p1561_p9)
}
  0x33   :  { %s1644_s3 = smov 128   ;;  %s1645_s23 = smov 8  }
  0x34   :  { %33 = dma.hbm_to_vmem [thread:$0]  %s2048_s0, 512, %s28_s25, [#allocation3], %s1644_s3, %s1644_s3, %s1645_s23  }
  0x35   :  { %s1646_s16 = smov [#allocation7]   ;;  %s1647_s26 = smov [#allocation10]  }
  0x36   :  { %s51_s1 = sshll.u32 %s1646_s16, 4  ;;  %s75_s17 = sshll.u32 %s1647_s26, 4  ;;  %s52_s1 = int_to_ptr.vmem [resolvable:$true] %s51_s1  ;;  %s76_s17 = int_to_ptr.vmem [resolvable:$true] %s75_s17 }
  0x37   :  { %s1565_s22 = scalar_lea.hbm %s2050_s2, 512 }
  0x38   :  { %p1566_p10 = scmp.ne.s32.totalorder %s2050_s2, %s1565_s22  ;;  %p1569_p11 = scmp.lt.u32.totalorder %s1565_s22, %s2050_s2 }
  0x3a   :  { %p1571_p12 = pnand %p1569_p11, %p1566_p10 }
  0x3c   :  { %1574 = shalt.err (!%p1571_p12)
}
  0x3d   :  { %s1575_s0 = scalar_lea.vmem %s52_s1, 512  ;;  %p1580_p0 = scmp.lt.s32.totalorder %s52_s1, %s52_s1 }
  0x3e   :  { %p1576_p13 = scmp.ne.s32.totalorder %s52_s1, %s1575_s0  ;;  %p1581_p1 = scmp.lt.s32.totalorder %s1575_s0, %s1575_s0 }
  0x40   :  { %p1582_p2 = por %p1581_p1, %p1580_p0 }
  0x42   :  { %p1583_p3 = pnand %p1582_p2, %p1576_p13 }
  0x44   :  { %1586 = shalt.err (!%p1583_p3)
}
  0x45   :  { %57 = dma.hbm_to_vmem [thread:$0]  %s2050_s2, 512, %s52_s1, [#allocation6], %s1640_s18, %s1640_s18, %s1641_s19  }
  0x46   :  { %s1587_s16 = scalar_lea.hbm %s2052_s4, 512 }
  0x47   :  { %p1588_p4 = scmp.ne.s32.totalorder %s2052_s4, %s1587_s16  ;;  %p1591_p5 = scmp.lt.u32.totalorder %s1587_s16, %s2052_s4 }
  0x49   :  { %p1593_p6 = pnand %p1591_p5, %p1588_p4 }
  0x4b   :  { %1596 = shalt.err (!%p1593_p6)
}
  0x4c   :  { %s1597_s24 = scalar_lea.vmem %s76_s17, 512  ;;  %p1602_p8 = scmp.lt.s32.totalorder %s76_s17, %s76_s17 }
  0x4d   :  { %p1598_p7 = scmp.ne.s32.totalorder %s76_s17, %s1597_s24  ;;  %p1603_p9 = scmp.lt.s32.totalorder %s1597_s24, %s1597_s24 }
  0x4f   :  { %p1604_p10 = por %p1603_p9, %p1602_p8 }
  0x51   :  { %p1605_p11 = pnand %p1604_p10, %p1598_p7 }
  0x53   :  { %1608 = shalt.err (!%p1605_p11)
}
  0x54   :  { %81 = dma.hbm_to_vmem [thread:$0]  %s2052_s4, 512, %s76_s17, [#allocation9], %s1640_s18, %s1640_s18, %s1641_s19  }
  0x55   :  { %1631 = dma.done.wait [#allocation3], 512  }
  0x56   :  { %1632 = vsyncadd [#allocation3], 4294966784 }
  0x57   :  { %1633 = dma.done.wait [#allocation6], 1024  }
  0x58   :  { %1634 = vsyncadd [#allocation6], 4294966272 }
  0x59   :  { %1635 = dma.done.wait [#allocation9], 2048  }
  0x5a   :  { %1636 = vsyncadd [#allocation9], 4294965248  ;;  %v1467_v0 = vld [vmem:[#allocation7] sm:$0xff]   ;;  %v1468_v1 = vld [vmem:[#allocation7 + $0x8] sm:$0xff]   ;;  %vm152_vm0 = vcmask 523264   ;;  %s1648_s4 = smov 124   ;;  %v240_v50 = vlaneseq }
  0x5b   :  { %1369 = vmatprep.subr.bf16.mxu1 %v1467_v0  ;;  %v1469_v2 = vld [vmem:[#allocation7 + $0x10] sm:$0xff]   ;;  %v114_v3 = vld [vmem:[#allocation2] sm:$0xff]  ;;  %v115_v4 = vld [vmem:[#allocation2 + $0x8] sm:$0xff]  ;;  %s1649_s19 = smov 60   ;;  %vm415_vm1 = vcmask 490496   ;;  %s1650_s17 = smov 120  }
  0x5c   :  { %1370 = vmatpush3.bf16.msra.mxu1 %v1467_v0  ;;  %v118_v5 = vpack.c.bf16 %v115_v4, %v114_v3  ;;  %v1470_v6 = vld [vmem:[#allocation7 + $0x18] sm:$0xff]   ;;  %v116_v7 = vld [vmem:[#allocation2 + $0x10] sm:$0xff]  ;;  %v1471_v9 = vld [vmem:[#allocation5] sm:$0xff]   ;;  %s1651_s27 = smov 56   ;;  %vm425_vm2 = vcmask 457728   ;;  %s1652_s28 = smov 48  }
  0x5d   :  { %1371 = vmatprep.subr.bf16.mxu1 %v1468_v1  ;;  %v117_v8 = vld [vmem:[#allocation2 + $0x18] sm:$0xff]  ;;  %v1472_v11 = vld [vmem:[#allocation5 + $0x8] sm:$0xff]   ;;  %v1473_v12 = vld [vmem:[#allocation5 + $0x10] sm:$0xff]   ;;  %s1653_s29 = smov 112   ;;  %vm435_vm3 = vcmask 392192   ;;  %s1654_s0 = smov 32  }
  0x5e   :  { %1377 = vmatprep.mubr.msk.bf16.mxu1 %vm152_vm0, %v118_v5  ;;  %v119_v10 = vpack.c.bf16 %v117_v8, %v116_v7  ;;  %v1474_v13 = vld [vmem:[#allocation5 + $0x18] sm:$0xff]   ;;  %s1655_s25 = smov 96   ;;  %v1835_v51 = vshrl.u32 %v240_v50, 7  ;;  %vm445_vm4 = vcmask 261120   ;;  %vm606_vm5 = vcmask 1040384  }
  0x5f   :  { %vm627_vm7 = vcmask 1046528  }
  0x60   :  { %1372 = vmatpush3.bf16.msra.mxu1 %v1468_v1  ;;  %v1839_v55 = vsub.s32 0, %v1835_v51 }
  0x61   :  { %1373 = vmatprep.subr.bf16.mxu1 %v1469_v2 }
  0x64   :  { %1374 = vmatpush3.bf16.msra.mxu1 %v1469_v2 }
  0x65   :  { %1375 = vmatprep.subr.bf16.mxu1 %v1470_v6 }
  0x68   :  { %1376 = vmatpush3.bf16.msra.mxu1 %v1470_v6 }
  0x69   :  { %1381 = vmatprep.subr.bf16.mxu1 %v1471_v9 }
  0x6b   :  { %1378 = vmatmul.mubr.msk.bf16.vlgmr.msra.gmra.mrb[0].mxu1 %vm152_vm0, %v119_v10 }
  0x6c   :  { %1382 = vmatpush3.bf16.msra.mxu1 %v1471_v9  ;;  %1389 = vmatprep.mubr.msk.bf16.mxu1 %vm152_vm0, %v118_v5 }
  0x6d   :  { %1383 = vmatprep.subr.bf16.mxu1 %v1472_v11 }
  0x70   :  { %1384 = vmatpush3.bf16.msra.mxu1 %v1472_v11 }
  0x71   :  { %1385 = vmatprep.subr.bf16.mxu1 %v1473_v12 }
  0x74   :  { %1386 = vmatpush3.bf16.msra.mxu1 %v1473_v12 }
  0x75   :  { %1387 = vmatprep.subr.bf16.mxu1 %v1474_v13 }
  0x78   :  { %1388 = vmatpush3.bf16.msra.mxu1 %v1474_v13 }
  0x7b   :  { %1390 = vmatmul.mubr.msk.bf16.vlgmr.msra.gmra.mrb[4].mxu1 %vm152_vm0, %v119_v10 }
 0x13e   :  { %v1806_v14 = vpop.f32.mrb[0].mxu1 }
 0x13f   :  { %v1808_v15 = vpop.f32.mrb[1].mxu1 }
 0x140   :  { %v1810_v16 = vpop.f32.mrb[2].mxu1 }
 0x141   :  { %v1812_v17 = vpop.f32.mrb[3].mxu1 }
 0x142   :  { %v210_v18 = vadd.f32 %v1812_v17, %v1808_v15 }
 0x144   :  { %v211_v19 = vadd.f32 %v1806_v14, %v210_v18 }
 0x146   :  { %v1818_v20 = vadd.f32 %v1810_v16, %v211_v19 }
 0x14e   :  { %v1391_v21 = vpop.f32.mrb[4].mxu1 }
 0x14f   :  { %v378_v22 = vpop.f32.mrb[5].mxu1  ;;  %v398_v28 = vsel %vm152_vm0, %v1391_v21, 0.0 }
 0x150   :  { %v1392_v23 = vpop.f32.mrb[6].mxu1  ;;  %v395_v25 = vsel %vm152_vm0, %v378_v22, 0.0 }
 0x151   :  { %v381_v24 = vpop.f32.mrb[7].mxu1  ;;  %v400_v30 = vsel %vm152_vm0, %v1392_v23, 0.0 }
 0x152   :  { %v396_v26 = vsel %vm152_vm0, %v381_v24, 0.0 }
 0x153   :  { %v397_v27 = vadd.f32 %v396_v26, %v395_v25 }
 0x155   :  { %v399_v29 = vadd.f32 %v398_v28, %v397_v27 }
 0x157   :  { %v401_v31 = vadd.f32 %v400_v30, %v399_v29 }
 0x159   :  { %v402_v32 = vrot.slane %v401_v31, 4 }
 0x15b   :  { %v403_v33 = vadd.f32 %v402_v32, %v401_v31 }
 0x15d   :  { %v404_v34 = vrot.slane %v403_v33, 2 }
 0x15f   :  { %v405_v35 = vadd.f32 %v404_v34, %v403_v33  ;;  %v1475_v33 = vld [vmem:[#allocation8 + $0x20] sm:$0xff]   ;;  %v1476_v34 = vld [vmem:[#allocation8 + $0x28] sm:$0xff]  }
 0x160   :  { %1393 = vmatprep.subr.bf16.mxu0 %v1475_v33 }
 0x161   :  { %v406_v36 = vrot.slane %v405_v35, 1  ;;  %1394 = vmatpush3.bf16.msra.mxu0 %v1475_v33 }
 0x162   :  { %1395 = vmatprep.subr.bf16.mxu0 %v1476_v34 }
 0x163   :  { %v407_v37 = vadd.f32 %v406_v36, %v405_v35  ;;  %v1477_v35 = vld [vmem:[#allocation8 + $0x30] sm:$0xff]   ;;  %v1478_v36 = vld [vmem:[#allocation8 + $0x38] sm:$0xff]  }
 0x165   :  { %409 = vrot.lane.b32.xlu0 %v407_v37, %s1648_s4  ;;  %1396 = vmatpush3.bf16.msra.mxu0 %v1476_v34 }
 0x166   :  { %1397 = vmatprep.subr.bf16.mxu0 %v1477_v35 }
 0x169   :  { %412 = vrot.lane.b32.xlu0 %v407_v37, %s1649_s19  ;;  %1398 = vmatpush3.bf16.msra.mxu0 %v1477_v35 }
 0x16a   :  { %1399 = vmatprep.subr.bf16.mxu0 %v1478_v36 }
 0x16d   :  { %1400 = vmatpush3.bf16.msra.mxu0 %v1478_v36  ;;  %v1484_v36 = vld [vmem:[#allocation8 + $0x48] sm:$0xff]  }
 0x1d7   :  { %v410_v38 = vpop.permute.xlu0 %409 }
 0x1db   :  { %v413_v39 = vpop.permute.xlu0 %412 }
 0x1dc   :  { %v416_v40 = vsel %vm415_vm1, %v410_v38, %v413_v39 }
 0x1dd   :  { %v417_v41 = vadd.f32 %v416_v40, %v407_v37  ;;  %v1479_v37 = vld [vmem:[#allocation8] sm:$0xff]  }
 0x1de   :  { %1405 = vmatprep.subr.bf16.mxu0 %v1479_v37 }
 0x1df   :  { %419 = vrot.lane.b32.xlu1 %v417_v41, %s1650_s17 }
 0x1e3   :  { %422 = vrot.lane.b32.xlu1 %v417_v41, %s1651_s27 }
 0x251   :  { %v420_v42 = vpop.permute.xlu1 %419 }
 0x255   :  { %v423_v43 = vpop.permute.xlu1 %422 }
 0x256   :  { %v426_v44 = vsel %vm425_vm2, %v420_v42, %v423_v43 }
 0x257   :  { %v427_v45 = vadd.f32 %v426_v44, %v417_v41 }
 0x259   :  { %432 = vrot.lane.b32.xlu1 %v427_v45, %s1652_s28  ;;  %429 = vrot.lane.b32.xlu0 %v427_v45, %s1653_s29 }
 0x2cb   :  { %v433_v46 = vpop.permute.xlu1 %432  ;;  %v430_v47 = vpop.permute.xlu0 %429 }
 0x2cc   :  { %v436_v48 = vsel %vm435_vm3, %v430_v47, %v433_v46  ;;  %v1303_v46 = vld [vmem:[%s2053_s5] ss:$0 sm:$0xff] }
 0x2cd   :  { %v437_v49 = vadd.f32 %v436_v48, %v427_v45 }
 0x2cf   :  { %442 = vrot.lane.b32.xlu1 %v437_v49, %s1654_s0  ;;  %439 = vrot.lane.b32.xlu0 %v437_v49, %s1655_s25 }
 0x341   :  { %v443_v52 = vpop.permute.xlu1 %442  ;;  %v440_v53 = vpop.permute.xlu0 %439 }
 0x342   :  { %v446_v54 = vsel %vm445_vm4, %v440_v53, %v443_v52  ;;  %v1304_v52 = vld [vmem:[%s2054_s6] ss:$0 sm:$0xff] }
 0x343   :  { %v447_v56 = vadd.f32 %v446_v54, %v437_v49 }
 0x345   :  { %v448_v57 = vmul.f32 0.001953125, %v447_v56 }
 0x347   :  { %v452_v58 = vrot.slane %v448_v57, %v1839_v55 }
 0x349   :  { %v1842_v59 = vsub.f32 %v378_v22, %v452_v58  ;;  %v1844_v60 = vsub.f32 %v381_v24, %v452_v58  ;;  %v1846_v61 = vsub.f32 %v1391_v21, %v452_v58  ;;  %v1848_v62 = vsub.f32 %v1392_v23, %v452_v58 }
 0x34a   :  { %v554_v58 = vand.u32 15, %v1835_v51 }
 0x34b   :  { %v457_v63 = vmul.f32 %v1842_v59, %v1842_v59  ;;  %v458_v0 = vmul.f32 %v1844_v60, %v1844_v60  ;;  %v459_v1 = vmul.f32 %v1846_v61, %v1846_v61  ;;  %v460_v2 = vmul.f32 %v1848_v62, %v1848_v62 }
 0x34c   :  { %vm598_vm6 = vcmp.eq.s32.totalorder %v554_v58, 0 }
 0x34d   :  { %v461_v3 = vsel %vm152_vm0, %v457_v63, 0.0  ;;  %v462_v4 = vsel %vm152_vm0, %v458_v0, 0.0  ;;  %v464_v6 = vsel %vm152_vm0, %v459_v1, 0.0  ;;  %v466_v8 = vsel %vm152_vm0, %v460_v2, 0.0 }
 0x34e   :  { %v463_v5 = vadd.f32 %v462_v4, %v461_v3 }
 0x350   :  { %v465_v7 = vadd.f32 %v464_v6, %v463_v5 }
 0x352   :  { %v467_v9 = vadd.f32 %v466_v8, %v465_v7  ;;  %v1480_v7 = vld [vmem:[#allocation8 + $0x8] sm:$0xff]  }
 0x354   :  { %v468_v10 = vrot.slane %v467_v9, 4 }
 0x356   :  { %v469_v11 = vadd.f32 %v468_v10, %v467_v9 }
 0x358   :  { %v470_v12 = vrot.slane %v469_v11, 2 }
 0x35a   :  { %v471_v13 = vadd.f32 %v470_v12, %v469_v11  ;;  %v548_v12 = vadd.s32 16, %v1835_v51 }
 0x35c   :  { %v472_v18 = vrot.slane %v471_v13, 1 }
 0x35e   :  { %v473_v19 = vadd.f32 %v472_v18, %v471_v13  ;;  %v547_v13 = vadd.s32 8, %v1835_v51  ;;  %v1481_v18 = vld [vmem:[#allocation8 + $0x10] sm:$0xff]  }
 0x360   :  { %478 = vrot.lane.b32.xlu1 %v473_v19, %s1649_s19  ;;  %475 = vrot.lane.b32.xlu0 %v473_v19, %s1648_s4 }
 0x3d2   :  { %v479_v21 = vpop.permute.xlu1 %478  ;;  %v476_v22 = vpop.permute.xlu0 %475 }
 0x3d3   :  { %v481_v23 = vsel %vm415_vm1, %v476_v22, %v479_v21  ;;  %v568_v21 = vand.u32 15, %v548_v12 }
 0x3d4   :  { %v482_v24 = vadd.f32 %v481_v23, %v473_v19  ;;  %v561_v23 = vand.u32 15, %v547_v13 }
 0x3d5   :  { %vm600_vm8 = vcmp.eq.s32.totalorder %v568_v21, 0 }
 0x3d6   :  { %487 = vrot.lane.b32.xlu1 %v482_v24, %s1651_s27  ;;  %484 = vrot.lane.b32.xlu0 %v482_v24, %s1650_s17  ;;  %vm624_vm9 = vcmp.eq.s32.totalorder %v561_v23, 15 }
 0x448   :  { %v488_v25 = vpop.permute.xlu1 %487  ;;  %v485_v26 = vpop.permute.xlu0 %484 }
 0x449   :  { %v490_v27 = vsel %vm425_vm2, %v485_v26, %v488_v25  ;;  %v1482_v25 = vld [vmem:[#allocation8 + $0x18] sm:$0xff]  }
 0x44a   :  { %v491_v28 = vadd.f32 %v490_v27, %v482_v24 }
 0x44c   :  { %496 = vrot.lane.b32.xlu1 %v491_v28, %s1652_s28  ;;  %493 = vrot.lane.b32.xlu0 %v491_v28, %s1653_s29 }
 0x4be   :  { %v497_v29 = vpop.permute.xlu1 %496  ;;  %v494_v30 = vpop.permute.xlu0 %493 }
 0x4bf   :  { %v499_v31 = vsel %vm435_vm3, %v494_v30, %v497_v29  ;;  %v1483_v30 = vld [vmem:[#allocation8 + $0x40] sm:$0xff]  }
 0x4c0   :  { %v500_v32 = vadd.f32 %v499_v31, %v491_v28 }
 0x4c2   :  { %505 = vrot.lane.b32.xlu1 %v500_v32, %s1654_s0  ;;  %502 = vrot.lane.b32.xlu0 %v500_v32, %s1655_s25 }
 0x534   :  { %v506_v38 = vpop.permute.xlu1 %505  ;;  %v503_v39 = vpop.permute.xlu0 %502 }
 0x535   :  { %v508_v40 = vsel %vm445_vm4, %v503_v39, %v506_v38  ;;  %v549_v38 = vadd.s32 24, %v1835_v51  ;;  %v1485_v39 = vld [vmem:[#allocation8 + $0x50] sm:$0xff]  }
 0x536   :  { %v509_v41 = vadd.f32 %v508_v40, %v500_v32 }
 0x537   :  { %v575_v40 = vand.u32 15, %v549_v38 }
 0x538   :  { %v510_v42 = vmul.f32 0.001953125, %v509_v41 }
 0x539   :  { %vm626_vm10 = vcmp.eq.s32.totalorder %v575_v40, 15 }
 0x53a   :  { %v511_v43 = vadd.f32 1e-05, %v510_v42  ;;  %v1486_v42 = vld [vmem:[#allocation8 + $0x58] sm:$0xff]  }
 0x53c   :  { %1491 = vrsqrt.f32 %v511_v43 }
 0x546   :  { %v1492_v44 = vpop.eup %1491 }
 0x547   :  { %v516_v45 = vrot.slane %v1492_v44, %v1839_v55 }
 0x549   :  { %v517_v47 = vmul.f32 %v516_v45, %v1842_v59  ;;  %v518_v48 = vmul.f32 %v516_v45, %v1844_v60  ;;  %v519_v49 = vmul.f32 %v516_v45, %v1846_v61  ;;  %v520_v50 = vmul.f32 %v516_v45, %v1848_v62 }
 0x54b   :  { %v527_v53 = vmul.f32 %v1303_v46, %v517_v47  ;;  %v528_v54 = vmul.f32 %v1303_v46, %v518_v48  ;;  %v529_v56 = vmul.f32 %v1303_v46, %v519_v49  ;;  %v530_v57 = vmul.f32 %v1303_v46, %v520_v50 }
 0x54d   :  { %v537_v63 = vadd.f32 %v1304_v52, %v527_v53  ;;  %v538_v0 = vadd.f32 %v1304_v52, %v528_v54  ;;  %v539_v1 = vadd.f32 %v1304_v52, %v529_v56  ;;  %v540_v59 = vadd.f32 %v1304_v52, %v530_v57 }
 0x54f   :  { %v541_v2 = vmax.f32 %v537_v63, 0.0  ;;  %v542_v60 = vmax.f32 %v538_v0, 0.0  ;;  %v1886_v3 = vmax.f32 %v539_v1, 0.0  ;;  %v1888_v61 = vmax.f32 %v540_v59, 0.0 }
 0x551   :  { %v607_v62 = vrot.slane %v541_v2, 7  ;;  %v608_v4 = vrot.slane %v542_v60, 7  ;;  %v663_v5 = vpack.c.bf16 %v542_v60, %v541_v2  ;;  %v664_v6 = vpack.c.bf16 %v1888_v61, %v1886_v3 }
 0x552   :  { %v610_v19 = vrot.slane %v1886_v3, 7  ;;  %v629_v22 = vrot.slane %v542_v60, 1  ;;  %v631_v24 = vrot.slane %v1886_v3, 1  ;;  %v612_v26 = vrot.slane %v1888_v61, 7 }
 0x553   :  { %v609_v8 = vsel %vm606_vm5, %v607_v62, %v608_v4  ;;  %v618_v9 = vsel %vm606_vm5, 0.0, %v607_v62  ;;  %1401 = vmatprep.mubr.msk.bf16.mxu0 %vm152_vm0, %v663_v5  ;;  %v628_v27 = vrot.slane %v541_v2, 1  ;;  %v633_v41 = vrot.slane %v1888_v61, 1 }
 0x554   :  { %v619_v10 = vsel %vm598_vm6, 0.0, %v618_v9  ;;  %1402 = vmatmul.mubr.msk.bf16.vlgmr.msra.gmra.mrb[0].mxu0 %vm152_vm0, %v664_v6  ;;  %v611_v28 = vsel %vm606_vm5, %v608_v4, %v610_v19  ;;  %v632_v29 = vsel %vm627_vm7, %v629_v22, %v631_v24  ;;  %v613_v31 = vsel %vm606_vm5, %v610_v19, %v612_v26 }
 0x555   :  { %v652_v11 = vpack.c.bf16 %v609_v8, %v619_v10  ;;  %1406 = vmatpush3.bf16.msra.mxu0 %v1479_v37  ;;  %v621_v32 = vsel %vm600_vm8, 0.0, %v611_v28  ;;  %v630_v33 = vsel %vm627_vm7, %v628_v27, %v629_v22  ;;  %v641_v34 = vsel %vm624_vm9, 0.0, %v632_v29 }
 0x556   :  { %1407 = vmatprep.subr.bf16.mxu0 %v1480_v7  ;;  %v653_v35 = vpack.c.bf16 %v613_v31, %v621_v32  ;;  %v832_v37 = vpack.c.bf16 %v641_v34, %v630_v33  ;;  %v639_v43 = vsel %vm627_vm7, %v633_v41, 0.0  ;;  %v634_v44 = vsel %vm627_vm7, %v631_v24, %v633_v41 }
 0x557   :  { %1413 = vmatprep.mubr.msk.bf16.mxu0 %vm152_vm0, %v652_v11  ;;  %v643_v45 = vsel %vm626_vm10, 0.0, %v639_v43 }
 0x558   :  { %v833_v51 = vpack.c.bf16 %v643_v45, %v634_v44 }
 0x559   :  { %1408 = vmatpush3.bf16.msra.mxu0 %v1480_v7 }
 0x55a   :  { %1409 = vmatprep.subr.bf16.mxu0 %v1481_v18 }
 0x55d   :  { %1410 = vmatpush3.bf16.msra.mxu0 %v1481_v18 }
 0x55e   :  { %1411 = vmatprep.subr.bf16.mxu0 %v1482_v25 }
 0x561   :  { %1412 = vmatpush3.bf16.msra.mxu0 %v1482_v25 }
 0x562   :  { %1417 = vmatprep.subr.bf16.mxu0 %v1483_v30 }
 0x564   :  { %1414 = vmatmul.mubr.msk.bf16.vlgmr.msra.gmra.mrb[0].mxu0 %vm152_vm0, %v653_v35 }
 0x565   :  { %1418 = vmatpush3.bf16.msra.mxu0 %v1483_v30  ;;  %1425 = vmatprep.mubr.msk.bf16.mxu0 %vm152_vm0, %v832_v37 }
 0x566   :  { %1419 = vmatprep.subr.bf16.mxu0 %v1484_v36 }
 0x569   :  { %1420 = vmatpush3.bf16.msra.mxu0 %v1484_v36 }
 0x56a   :  { %1421 = vmatprep.subr.bf16.mxu0 %v1485_v39 }
 0x56d   :  { %1422 = vmatpush3.bf16.msra.mxu0 %v1485_v39 }
 0x56e   :  { %1423 = vmatprep.subr.bf16.mxu0 %v1486_v42 }
 0x571   :  { %1424 = vmatpush3.bf16.msra.mxu0 %v1486_v42 }
 0x574   :  { %1426 = vmatmul.mubr.msk.bf16.vlgmr.msra.gmra.mrb[0].mxu0 %vm152_vm0, %v833_v51 }
 0x647   :  { %v1427_v46 = vpop.f32.mrb[0].mxu0 }
 0x648   :  { %v898_v47 = vpop.f32.mrb[1].mxu0  ;;  %v922_v54 = vsel %vm152_vm0, %v1427_v46, 0.0 }
 0x649   :  { %v1428_v48 = vpop.f32.mrb[2].mxu0  ;;  %v919_v50 = vsel %vm152_vm0, %v898_v47, 0.0 }
 0x64a   :  { %v901_v49 = vpop.f32.mrb[3].mxu0  ;;  %v924_v57 = vsel %vm152_vm0, %v1428_v48, 0.0 }
 0x64b   :  { %v920_v52 = vsel %vm152_vm0, %v901_v49, 0.0 }
 0x64c   :  { %v921_v53 = vadd.f32 %v920_v52, %v919_v50 }
 0x64e   :  { %v923_v56 = vadd.f32 %v922_v54, %v921_v53  ;;  %v213_v53 = vrot.slane %v1818_v20, 4 }
 0x650   :  { %v925_v58 = vadd.f32 %v924_v57, %v923_v56  ;;  %v214_v54 = vadd.f32 %v213_v53, %v1818_v20  ;;  %v1489_v20 = vld [vmem:[#allocation10 + $0x10] sm:$0xff]  }
 0x652   :  { %v926_v63 = vrot.slane %v925_v58, 4  ;;  %v215_v56 = vrot.slane %v214_v54, 2 }
 0x654   :  { %v927_v0 = vadd.f32 %v926_v63, %v925_v58  ;;  %v216_v57 = vadd.f32 %v215_v56, %v214_v54 }
 0x656   :  { %v928_v1 = vrot.slane %v927_v0, 2 }
 0x658   :  { %v929_v59 = vadd.f32 %v928_v1, %v927_v0 }
 0x65a   :  { %v930_v2 = vrot.slane %v929_v59, 1 }
 0x65c   :  { %v931_v60 = vadd.f32 %v930_v2, %v929_v59  ;;  %v217_v59 = vrot.slane %v216_v57, 1  ;;  %v1487_v2 = vld [vmem:[#allocation10] sm:$0xff]  }
 0x65d   :  { %1429 = vmatprep.subr.bf16.mxu1 %v1487_v2 }
 0x65e   :  { %936 = vrot.lane.b32.xlu1 %v931_v60, %s1649_s19  ;;  %933 = vrot.lane.b32.xlu0 %v931_v60, %s1648_s4 }
 0x65f   :  { %1430 = vmatpush3.bf16.msra.mxu1 %v1487_v2 }
 0x6d0   :  { %v937_v3 = vpop.permute.xlu1 %936  ;;  %v934_v61 = vpop.permute.xlu0 %933 }
 0x6d1   :  { %v939_v62 = vsel %vm415_vm1, %v934_v61, %v937_v3  ;;  %v1488_v3 = vld [vmem:[#allocation10 + $0x8] sm:$0xff]   ;;  %v1490_v61 = vld [vmem:[#allocation10 + $0x18] sm:$0xff]  }
 0x6d2   :  { %v940_v4 = vadd.f32 %v939_v62, %v931_v60  ;;  %v218_v60 = vadd.f32 %v217_v59, %v216_v57  ;;  %1431 = vmatprep.subr.bf16.mxu1 %v1488_v3 }
 0x6d3   :  { %1432 = vmatpush3.bf16.msra.mxu1 %v1488_v3 }
 0x6d4   :  { %945 = vrot.lane.b32.xlu1 %v940_v4, %s1651_s27  ;;  %942 = vrot.lane.b32.xlu0 %v940_v4, %s1650_s17 }
 0x6d5   :  { %1433 = vmatprep.subr.bf16.mxu1 %v1489_v20 }
 0x6d7   :  { %1434 = vmatpush3.bf16.msra.mxu1 %v1489_v20 }
 0x6d8   :  { %1435 = vmatprep.subr.bf16.mxu1 %v1490_v61 }
 0x6db   :  { %1436 = vmatpush3.bf16.msra.mxu1 %v1490_v61 }
 0x746   :  { %v946_v5 = vpop.permute.xlu1 %945  ;;  %v943_v6 = vpop.permute.xlu0 %942 }
 0x747   :  { %v948_v7 = vsel %vm425_vm2, %v943_v6, %v946_v5 }
 0x748   :  { %v949_v8 = vadd.f32 %v948_v7, %v940_v4 }
 0x74a   :  { %954 = vrot.lane.b32.xlu1 %v949_v8, %s1652_s28  ;;  %951 = vrot.lane.b32.xlu0 %v949_v8, %s1653_s29 }
 0x7bc   :  { %v955_v9 = vpop.permute.xlu1 %954  ;;  %v952_v10 = vpop.permute.xlu0 %951 }
 0x7bd   :  { %v957_v11 = vsel %vm435_vm3, %v952_v10, %v955_v9 }
 0x7be   :  { %v958_v12 = vadd.f32 %v957_v11, %v949_v8 }
 0x7c0   :  { %963 = vrot.lane.b32.xlu1 %v958_v12, %s1654_s0  ;;  %960 = vrot.lane.b32.xlu0 %v958_v12, %s1655_s25 }
 0x832   :  { %v964_v13 = vpop.permute.xlu1 %963  ;;  %v961_v18 = vpop.permute.xlu0 %960 }
 0x833   :  { %v966_v19 = vsel %vm445_vm4, %v961_v18, %v964_v13  ;;  %v1323_v13 = vld [vmem:[%s2055_s7] ss:$0 sm:$0xff] }
 0x834   :  { %v967_v21 = vadd.f32 %v966_v19, %v958_v12 }
 0x836   :  { %v968_v22 = vmul.f32 0.001953125, %v967_v21 }
 0x838   :  { %v972_v23 = vrot.slane %v968_v22, %v1839_v55 }
 0x83a   :  { %v1930_v24 = vsub.f32 %v898_v47, %v972_v23  ;;  %v1932_v25 = vsub.f32 %v901_v49, %v972_v23  ;;  %v1934_v26 = vsub.f32 %v1427_v46, %v972_v23  ;;  %v1936_v27 = vsub.f32 %v1428_v48, %v972_v23  ;;  %v1324_v23 = vld [vmem:[%s2056_s8] ss:$0 sm:$0xff] }
 0x83c   :  { %v977_v28 = vmul.f32 %v1930_v24, %v1930_v24  ;;  %v978_v29 = vmul.f32 %v1932_v25, %v1932_v25  ;;  %v979_v30 = vmul.f32 %v1934_v26, %v1934_v26  ;;  %v980_v31 = vmul.f32 %v1936_v27, %v1936_v27 }
 0x83e   :  { %v981_v32 = vsel %vm152_vm0, %v977_v28, 0.0  ;;  %v982_v33 = vsel %vm152_vm0, %v978_v29, 0.0  ;;  %v984_v35 = vsel %vm152_vm0, %v979_v30, 0.0  ;;  %v986_v37 = vsel %vm152_vm0, %v980_v31, 0.0 }
 0x83f   :  { %v983_v34 = vadd.f32 %v982_v33, %v981_v32 }
 0x841   :  { %v985_v36 = vadd.f32 %v984_v35, %v983_v34 }
 0x843   :  { %v987_v38 = vadd.f32 %v986_v37, %v985_v36 }
 0x845   :  { %v988_v39 = vrot.slane %v987_v38, 4 }
 0x847   :  { %v989_v40 = vadd.f32 %v988_v39, %v987_v38 }
 0x849   :  { %v990_v41 = vrot.slane %v989_v40, 2 }
 0x84b   :  { %v991_v42 = vadd.f32 %v990_v41, %v989_v40 }
 0x84d   :  { %v992_v43 = vrot.slane %v991_v42, 1 }
 0x84f   :  { %v993_v44 = vadd.f32 %v992_v43, %v991_v42 }
 0x851   :  { %998 = vrot.lane.b32.xlu1 %v993_v44, %s1649_s19  ;;  %995 = vrot.lane.b32.xlu0 %v993_v44, %s1648_s4 }
 0x8c3   :  { %v999_v45 = vpop.permute.xlu1 %998  ;;  %v996_v51 = vpop.permute.xlu0 %995 }
 0x8c4   :  { %v1001_v46 = vsel %vm415_vm1, %v996_v51, %v999_v45 }
 0x8c5   :  { %v1002_v47 = vadd.f32 %v1001_v46, %v993_v44 }
 0x8c7   :  { %1007 = vrot.lane.b32.xlu1 %v1002_v47, %s1651_s27  ;;  %1004 = vrot.lane.b32.xlu0 %v1002_v47, %s1650_s17 }
 0x939   :  { %v1008_v48 = vpop.permute.xlu1 %1007  ;;  %v1005_v49 = vpop.permute.xlu0 %1004 }
 0x93a   :  { %v1010_v50 = vsel %vm425_vm2, %v1005_v49, %v1008_v48 }
 0x93b   :  { %v1011_v52 = vadd.f32 %v1010_v50, %v1002_v47 }
 0x93d   :  { %1016 = vrot.lane.b32.xlu1 %v1011_v52, %s1652_s28  ;;  %1013 = vrot.lane.b32.xlu0 %v1011_v52, %s1653_s29 }
 0x9af   :  { %v1017_v58 = vpop.permute.xlu1 %1016  ;;  %v1014_v63 = vpop.permute.xlu0 %1013 }
 0x9b0   :  { %v1019_v0 = vsel %vm435_vm3, %v1014_v63, %v1017_v58 }
 0x9b1   :  { %v1020_v1 = vadd.f32 %v1019_v0, %v1011_v52 }
 0x9b3   :  { %1025 = vrot.lane.b32.xlu1 %v1020_v1, %s1654_s0  ;;  %1022 = vrot.lane.b32.xlu0 %v1020_v1, %s1655_s25 }
 0x9b7   :  { %220 = vrot.lane.b32.xlu0 %v218_v60, %s1650_s17 }
 0xa25   :  { %v1026_v62 = vpop.permute.xlu1 %1025  ;;  %v1023_v4 = vpop.permute.xlu0 %1022 }
 0xa26   :  { %v1028_v5 = vsel %vm445_vm4, %v1023_v4, %v1026_v62 }
 0xa27   :  { %v1029_v6 = vadd.f32 %v1028_v5, %v1020_v1 }
 0xa29   :  { %v1030_v7 = vmul.f32 0.001953125, %v1029_v6  ;;  %v221_v8 = vpop.permute.xlu0 %220 }
 0xa2a   :  { %v223_v9 = vadd.f32 %v221_v8, %v218_v60 }
 0xa2b   :  { %v1031_v10 = vadd.f32 1e-05, %v1030_v7 }
 0xa2c   :  { %225 = vrot.lane.b32.xlu0 %v223_v9, %s1653_s29 }
 0xa2d   :  { %1493 = vrsqrt.f32 %v1031_v10 }
 0xa37   :  { %v1494_v11 = vpop.eup %1493 }
 0xa38   :  { %v1036_v12 = vrot.slane %v1494_v11, %v1839_v55 }
 0xa3a   :  { %v1037_v18 = vmul.f32 %v1036_v12, %v1930_v24  ;;  %v1038_v19 = vmul.f32 %v1036_v12, %v1932_v25  ;;  %v1039_v21 = vmul.f32 %v1036_v12, %v1934_v26  ;;  %v1040_v22 = vmul.f32 %v1036_v12, %v1936_v27 }
 0xa3c   :  { %v1047_v28 = vmul.f32 %v1323_v13, %v1037_v18  ;;  %v1048_v29 = vmul.f32 %v1323_v13, %v1038_v19  ;;  %v1049_v30 = vmul.f32 %v1323_v13, %v1039_v21  ;;  %v1050_v31 = vmul.f32 %v1323_v13, %v1040_v22 }
 0xa3e   :  { %v1057_v32 = vadd.f32 %v1324_v23, %v1047_v28  ;;  %v1058_v33 = vadd.f32 %v1324_v23, %v1048_v29  ;;  %v1059_v34 = vadd.f32 %v1324_v23, %v1049_v30  ;;  %v1060_v35 = vadd.f32 %v1324_v23, %v1050_v31 }
 0xa40   :  { %v1061_v36 = vmax.f32 %v1057_v32, 0.0  ;;  %v1062_v24 = vmax.f32 %v1058_v33, 0.0  ;;  %v1063_v37 = vmax.f32 %v1059_v34, 0.0  ;;  %v1064_v25 = vmax.f32 %v1060_v35, 0.0 }
 0xa42   :  { %v1073_v38 = vpack.c.bf16 %v1062_v24, %v1061_v36  ;;  %v1074_v26 = vpack.c.bf16 %v1064_v25, %v1063_v37 }
 0xa44   :  { %1437 = vmatprep.mubr.msk.bf16.mxu1 %vm152_vm0, %v1073_v38 }
 0xa45   :  { %1438 = vmatmul.mubr.msk.bf16.vlgmr.msra.gmra.mrb[8].mxu1 %vm152_vm0, %v1074_v26 }
 0xa9e   :  { %v226_v27 = vpop.permute.xlu0 %225 }
 0xa9f   :  { %v228_v39 = vadd.f32 %v226_v27, %v223_v9 }
 0xaa1   :  { %230 = vrot.lane.b32.xlu0 %v228_v39, %s1655_s25 }
 0xb13   :  { %v231_v40 = vpop.permute.xlu0 %230 }
 0xb14   :  { %v233_v41 = vadd.f32 %v231_v40, %v228_v39 }
 0xb16   :  { %235 = vrot.lane.b32.xlu0 %v233_v41, %s1640_s18 }
 0xb18   :  { %v1439_v42 = vpop.f32.mrb[8].mxu1 }
 0xb19   :  { %v1139_v43 = vpop.f32.mrb[9].mxu1 }
 0xb1a   :  { %v1440_v44 = vpop.f32.mrb[10].mxu1 }
 0xb1b   :  { %v1142_v45 = vpop.f32.mrb[11].mxu1 }
 0xb1c   :  { %v1156_v51 = vadd.f32 %v1142_v45, %v1139_v43 }
 0xb1e   :  { %v1157_v46 = vadd.f32 %v1439_v42, %v1156_v51 }
 0xb20   :  { %v1158_v47 = vadd.f32 %v1440_v44, %v1157_v46 }
 0xb22   :  { %v1159_v48 = vrot.slane %v1158_v47, 4 }
 0xb24   :  { %v1160_v49 = vadd.f32 %v1159_v48, %v1158_v47 }
 0xb26   :  { %v1161_v50 = vrot.slane %v1160_v49, 2 }
 0xb28   :  { %v1162_v52 = vadd.f32 %v1161_v50, %v1160_v49 }
 0xb2a   :  { %v1163_v53 = vrot.slane %v1162_v52, 1 }
 0xb2c   :  { %v1164_v54 = vadd.f32 %v1163_v53, %v1162_v52 }
 0xb2e   :  { %1166 = vrot.lane.b32.xlu1 %v1164_v54, %s1650_s17 }
 0xb88   :  { %v236_v56 = vpop.permute.xlu0 %235 }
 0xb89   :  { %v238_v57 = vadd.f32 %v236_v56, %v233_v41 }
 0xb8b   :  { %v239_v58 = vmul.f32 0.001953125, %v238_v57 }
 0xb8d   :  { %v243_v63 = vrot.slane %v239_v58, %v1839_v55 }
 0xb8f   :  { %v1984_v0 = vsub.f32 %v1808_v15, %v243_v63  ;;  %v1987_v1 = vsub.f32 %v1812_v17, %v243_v63  ;;  %v1990_v59 = vsub.f32 %v1806_v14, %v243_v63  ;;  %v1993_v2 = vsub.f32 %v1810_v16, %v243_v63 }
 0xb91   :  { %v248_v60 = vmul.f32 %v1984_v0, %v1984_v0  ;;  %v249_v3 = vmul.f32 %v1987_v1, %v1987_v1  ;;  %v250_v20 = vmul.f32 %v1990_v59, %v1990_v59  ;;  %v251_v17 = vmul.f32 %v1993_v2, %v1993_v2 }
 0xb93   :  { %v252_v15 = vadd.f32 %v249_v3, %v248_v60 }
 0xb95   :  { %v253_v61 = vadd.f32 %v252_v15, %v250_v20 }
 0xb97   :  { %v254_v62 = vadd.f32 %v253_v61, %v251_v17 }
 0xb99   :  { %v255_v14 = vrot.slane %v254_v62, 4 }
 0xb9b   :  { %v256_v4 = vadd.f32 %v255_v14, %v254_v62  ;;  %v1295_v14 = vld [vmem:[%s2059_s11] ss:$0 sm:$0xff] }
 0xb9d   :  { %v257_v5 = vrot.slane %v256_v4, 2 }
 0xb9f   :  { %v258_v16 = vadd.f32 %v257_v5, %v256_v4 }
 0xba0   :  { %v1167_v6 = vpop.permute.xlu1 %1166 }
 0xba1   :  { %v1169_v7 = vadd.f32 %v1167_v6, %v1164_v54  ;;  %v259_v8 = vrot.slane %v258_v16, 1 }
 0xba3   :  { %1171 = vrot.lane.b32.xlu1 %v1169_v7, %s1653_s29  ;;  %v260_v9 = vadd.f32 %v259_v8, %v258_v16 }
 0xba5   :  { %262 = vrot.lane.b32.xlu0 %v260_v9, %s1650_s17 }
 0xc15   :  { %v1172_v10 = vpop.permute.xlu1 %1171 }
 0xc16   :  { %v1174_v11 = vadd.f32 %v1172_v10, %v1169_v7 }
 0xc17   :  { %v263_v12 = vpop.permute.xlu0 %262 }
 0xc18   :  { %v265_v13 = vadd.f32 %v263_v12, %v260_v9  ;;  %1176 = vrot.lane.b32.xlu1 %v1174_v11, %s1655_s25 }
 0xc1a   :  { %267 = vrot.lane.b32.xlu0 %v265_v13, %s1653_s29 }
 0xc8a   :  { %v1177_v18 = vpop.permute.xlu1 %1176 }
 0xc8b   :  { %v1179_v19 = vadd.f32 %v1177_v18, %v1174_v11 }
 0xc8c   :  { %v268_v21 = vpop.permute.xlu0 %267 }
 0xc8d   :  { %v270_v22 = vadd.f32 %v268_v21, %v265_v13  ;;  %1181 = vrot.lane.b32.xlu1 %v1179_v19, %s1640_s18 }
 0xc8f   :  { %272 = vrot.lane.b32.xlu0 %v270_v22, %s1655_s25 }
 0xcff   :  { %v1182_v23 = vpop.permute.xlu1 %1181 }
 0xd00   :  { %v1184_v28 = vadd.f32 %v1182_v23, %v1179_v19 }
 0xd01   :  { %v273_v29 = vpop.permute.xlu0 %272 }
 0xd02   :  { %v1185_v30 = vmul.f32 0.001953125, %v1184_v28  ;;  %v275_v31 = vadd.f32 %v273_v29, %v270_v22 }
 0xd04   :  { %v1189_v32 = vrot.slane %v1185_v30, %v1839_v55  ;;  %277 = vrot.lane.b32.xlu0 %v275_v31, %s1640_s18 }
 0xd06   :  { %v1190_v33 = vsub.f32 %v1139_v43, %v1189_v32  ;;  %v1191_v34 = vsub.f32 %v1142_v45, %v1189_v32  ;;  %v1192_v35 = vsub.f32 %v1439_v42, %v1189_v32  ;;  %v1193_v36 = vsub.f32 %v1440_v44, %v1189_v32 }
 0xd08   :  { %v1194_v24 = vmul.f32 %v1190_v33, %v1190_v33  ;;  %v1195_v37 = vmul.f32 %v1191_v34, %v1191_v34  ;;  %v1196_v25 = vmul.f32 %v1192_v35, %v1192_v35  ;;  %v1197_v26 = vmul.f32 %v1193_v36, %v1193_v36 }
 0xd0a   :  { %v1198_v38 = vadd.f32 %v1195_v37, %v1194_v24 }
 0xd0c   :  { %v1199_v27 = vadd.f32 %v1198_v38, %v1196_v25 }
 0xd0e   :  { %v1200_v39 = vadd.f32 %v1199_v27, %v1197_v26 }
 0xd10   :  { %v1201_v40 = vrot.slane %v1200_v39, 4 }
 0xd12   :  { %v1202_v41 = vadd.f32 %v1201_v40, %v1200_v39 }
 0xd14   :  { %v1203_v51 = vrot.slane %v1202_v41, 2 }
 0xd16   :  { %v1204_v46 = vadd.f32 %v1203_v51, %v1202_v41 }
 0xd18   :  { %v1205_v47 = vrot.slane %v1204_v46, 1 }
 0xd1a   :  { %v1206_v48 = vadd.f32 %v1205_v47, %v1204_v46 }
 0xd1c   :  { %1208 = vrot.lane.b32.xlu1 %v1206_v48, %s1650_s17 }
 0xd76   :  { %v278_v52 = vpop.permute.xlu0 %277 }
 0xd77   :  { %v280_v53 = vadd.f32 %v278_v52, %v275_v31 }
 0xd79   :  { %v281_v54 = vmul.f32 0.001953125, %v280_v53 }
 0xd7b   :  { %v282_v56 = vadd.f32 1e-05, %v281_v54 }
 0xd7d   :  { %1495 = vrsqrt.f32 %v282_v56 }
 0xd87   :  { %v1496_v3 = vpop.eup %1495 }
 0xd88   :  { %v287_v20 = vrot.slane %v1496_v3, %v1839_v55 }
 0xd8a   :  { %v288_v15 = vmul.f32 %v287_v20, %v1984_v0  ;;  %v289_v17 = vmul.f32 %v287_v20, %v1987_v1  ;;  %v290_v61 = vmul.f32 %v287_v20, %v1990_v59  ;;  %v291_v62 = vmul.f32 %v287_v20, %v1993_v2  ;;  %v1331_v0 = vld [vmem:[%s2057_s9] ss:$0 sm:$0xff]  ;;  %s1656_s9 = smov [#allocation11]  }
 0xd8b   :  { %v1296_v1 = vld [vmem:[%s2060_s12] ss:$0 sm:$0xff]  ;;  %s1275_s12 = sshll.u32 %s1656_s9, 4  ;;  %s1276_s12 = int_to_ptr.vmem [resolvable:$true] %s1275_s12 }
 0xd8c   :  { %v298_v16 = vmul.f32 %v1295_v14, %v288_v15  ;;  %v299_v6 = vmul.f32 %v1295_v14, %v289_v17  ;;  %v300_v7 = vmul.f32 %v1295_v14, %v290_v61  ;;  %v301_v8 = vmul.f32 %v1295_v14, %v291_v62  ;;  %p1614_p13 = scmp.lt.s32.totalorder %s1276_s12, %s1276_s12 }
 0xd8e   :  { %v1209_v49 = vpop.permute.xlu1 %1208  ;;  %v308_v19 = vadd.f32 %v1296_v1, %v298_v16  ;;  %v309_v21 = vadd.f32 %v1296_v1, %v299_v6  ;;  %v310_v22 = vadd.f32 %v1296_v1, %v300_v7  ;;  %v311_v23 = vadd.f32 %v1296_v1, %v301_v8 }
 0xd8f   :  { %v1211_v43 = vadd.f32 %v1209_v49, %v1206_v48 }
 0xd91   :  { %1213 = vrot.lane.b32.xlu1 %v1211_v43, %s1653_s29 }
 0xe03   :  { %v1214_v42 = vpop.permute.xlu1 %1213 }
 0xe04   :  { %v1216_v44 = vadd.f32 %v1214_v42, %v1211_v43 }
 0xe06   :  { %1218 = vrot.lane.b32.xlu1 %v1216_v44, %s1655_s25 }
 0xe78   :  { %v1219_v45 = vpop.permute.xlu1 %1218 }
 0xe79   :  { %v1221_v50 = vadd.f32 %v1219_v45, %v1216_v44 }
 0xe7b   :  { %1223 = vrot.lane.b32.xlu1 %v1221_v50, %s1640_s18 }
 0xeed   :  { %v1224_v57 = vpop.permute.xlu1 %1223 }
 0xeee   :  { %v1226_v58 = vadd.f32 %v1224_v57, %v1221_v50 }
 0xef0   :  { %v1227_v63 = vmul.f32 0.001953125, %v1226_v58 }
 0xef2   :  { %v1228_v60 = vadd.f32 1e-05, %v1227_v63 }
 0xef4   :  { %1497 = vrsqrt.f32 %v1228_v60 }
 0xefe   :  { %v1498_v4 = vpop.eup %1497 }
 0xeff   :  { %v1233_v5 = vrot.slane %v1498_v4, %v1839_v55  ;;  %v1332_v55 = vld [vmem:[%s2058_s10] ss:$0 sm:$0xff]  ;;  %s1609_s10 = scalar_lea.vmem %s1276_s12, 512 }
 0xf00   :  { %p1610_p12 = scmp.ne.s32.totalorder %s1276_s12, %s1609_s10  ;;  %p1615_p0 = scmp.lt.s32.totalorder %s1609_s10, %s1609_s10 }
 0xf01   :  { %v1234_v59 = vmul.f32 %v1233_v5, %v1190_v33  ;;  %v1235_v2 = vmul.f32 %v1233_v5, %v1191_v34  ;;  %v1236_v9 = vmul.f32 %v1233_v5, %v1192_v35  ;;  %v1237_v10 = vmul.f32 %v1233_v5, %v1193_v36 }
 0xf02   :  { %p1616_p1 = por %p1615_p0, %p1614_p13 }
 0xf03   :  { %v1244_v11 = vmul.f32 %v1331_v0, %v1234_v59  ;;  %v1245_v12 = vmul.f32 %v1331_v0, %v1235_v2  ;;  %v1246_v13 = vmul.f32 %v1331_v0, %v1236_v9  ;;  %v1247_v18 = vmul.f32 %v1331_v0, %v1237_v10 }
 0xf04   :  { %p1617_p2 = pnand %p1616_p1, %p1610_p12 }
 0xf05   :  { %v1254_v28 = vadd.f32 %v1332_v55, %v1244_v11  ;;  %v1255_v29 = vadd.f32 %v1332_v55, %v1245_v12  ;;  %v1256_v30 = vadd.f32 %v1332_v55, %v1246_v13  ;;  %v1257_v31 = vadd.f32 %v1332_v55, %v1247_v18 }
 0xf07   :  { %v1258_v32 = vadd.f32 %v1254_v28, %v308_v19  ;;  %v1259_v33 = vadd.f32 %v1255_v29, %v309_v21  ;;  %v1260_v34 = vadd.f32 %v1256_v30, %v310_v22  ;;  %v1261_v35 = vadd.f32 %v1257_v31, %v311_v23 }
 0xf09   :  { %v1262_v36 = vmax.f32 %v1258_v32, 0.0  ;;  %v1263_v24 = vmax.f32 %v1259_v33, 0.0  ;;  %v1264_v37 = vmax.f32 %v1260_v34, 0.0  ;;  %v1265_v25 = vmax.f32 %v1261_v35, 0.0 }
 0xf0b   :  { %1266 = vst [vmem:[#allocation11] sm:$0xff] %v1262_v36  ;;  %1267 = vst [vmem:[#allocation11 + $0x8] sm:$0xff] %v1263_v24 }
 0xf0c   :  { %1268 = vst [vmem:[#allocation11 + $0x10] sm:$0xff] %v1264_v37  ;;  %1269 = vst [vmem:[#allocation11 + $0x18] sm:$0xff] %v1265_v25 }
 0xf0d   :  { %1620 = shalt.err (!%p1617_p2)
}
 0xf0e   :  { %s1621_s19 = scalar_lea.hbm %s2061_s13, 512 }
 0xf0f   :  { %p1622_p3 = scmp.ne.s32.totalorder %s2061_s13, %s1621_s19  ;;  %p1625_p4 = scmp.lt.u32.totalorder %s1621_s19, %s2061_s13 }
 0xf11   :  { %p1627_p5 = pnand %p1625_p4, %p1622_p3 }
 0xf13   :  { %1630 = shalt.err (!%p1627_p5)
}
 0xf14   :  { %1281 = dma.vmem_to_hbm [thread:$0]  %s1276_s12, 512, %s2061_s13, [#allocation4], %s1644_s3, %s1644_s3, %s1645_s23  }
 0xf15   :  { %1637 = dma.done.wait [#allocation4], 512  }
 0xf16   :  { %1638 = vsyncadd [#allocation4], 4294966784 }
 0xf17   :  { %1285 = vsyncpa [#allocation3], 1 }
 0xf18   :  { %1286 = vsyncpa [#allocation6], 1 }
 0xf19   :  { %1287 = vsyncpa [#allocation9], 1 }
 0xf1a   :  { %1288 = vsyncpa [#allocation4], 1 }

</bundles_post_ra>
